<compile_context>
chip_gen: v5e
topology: v5e:2x2
jax: 0.10.0
libtpu: 0.0.40
codegen_flags: <defaults>
</compile_context>

<pallas_src>
import functools

import jax
import jax.numpy as jnp
from jax.experimental import pallas as pl
from jax.experimental.pallas import tpu as pltpu


def _ffn_kernel(x_ref, w1_ref, b1_ref, w2_ref, b2_ref, o_ref, *,
                approximate_gelu, n_hidden_chunks, bf16_epilogue):
    # x_ref: (TM, E) bf16    w1_ref: (E, H) bf16   b1_ref: (1, H) f32
    # w2_ref: (H, E) bf16    b2_ref: (1, E) f32    o_ref: (TM, E) x.dtype
    x = x_ref[...]  # bf16 MXU operand
    hidden = w1_ref.shape[1]
    hc = hidden // n_hidden_chunks

    y = jnp.zeros(o_ref.shape, jnp.float32)
    # Static unroll over hidden chunks: partial h -> GELU -> accumulate into y.
    # Keeps the per-chunk f32 intermediate small and interleaves MXU with
    # EUP/VPU work.
    for k in range(n_hidden_chunks):
        cols = pl.ds(k * hc, hc)
        h = jnp.dot(x, w1_ref[:, cols], preferred_element_type=jnp.float32)
        h = h + b1_ref[:, cols]
        if bf16_epilogue:
            # bf16 GELU: packed (2 elem/lane) VPU/EUP on v6e/v7x, single cast.
            h = jax.nn.gelu(h.astype(jnp.bfloat16), approximate=approximate_gelu)
        else:
            # v5e has no bf16 VPU/EUP: GELU in f32, cast only for the MXU.
            h = jax.nn.gelu(h, approximate=approximate_gelu).astype(jnp.bfloat16)
        # TODO(synk): nn.Dropout(0.2) is identity in eval mode; training-mode
        # RNG masking (pltpu.prng_seed + pltpu.prng_random_bits) not implemented.
        y = y + jnp.dot(h, w2_ref[cols, :], preferred_element_type=jnp.float32)

    # Second GELU feeds the output directly -> keep it f32 for accuracy.
    y = jax.nn.gelu(y + b2_ref[...], approximate=approximate_gelu)
    o_ref[...] = (x.astype(jnp.float32) + y).astype(o_ref.dtype)  # residual add


@functools.partial(jax.jit, static_argnames=("approximate_gelu", "bf16_epilogue"))
def feed_forward(x, w1, b1, w2, b2, *, approximate_gelu=True, bf16_epilogue=True):
    """x: (bs, c, h, w); w1: (E, 4E); b1: (4E,); w2: (4E, E); b2: (E,).

    approximate_gelu=True (tanh) is the fast EUP path; it deviates slightly
    from torch nn.GELU()'s exact-erf default (max ~3e-3 per GELU).
    """
    bs, c, h, w = x.shape
    embed = h * w
    hidden = w1.shape[1]
    assert w1.shape == (embed, hidden) and w2.shape == (hidden, embed)

    rows = bs * c
    # Row tile: big tiles amortize the ~0.35us per-grid-step overhead; tiny
    # batches only pad to a sublane multiple instead of a full 128-row tile.
    if rows >= 4096:
        tm = 1024
    elif rows >= 1024:
        tm = 512
    elif rows >= 256:
        tm = 256
    elif rows >= 128:
        tm = 128
    else:
        tm = max(8, pl.cdiv(rows, 8) * 8)
    rows_pad = pl.cdiv(rows, tm) * tm
    # Feed both v7x TensorCores: avoid a single-step "parallel" grid when there
    # is enough work to split.
    if rows_pad // tm == 1 and tm >= 256:
        tm //= 2
        rows_pad = pl.cdiv(rows, tm) * tm
    grid = (rows_pad // tm,)

    # Hidden-dim chunking inside the kernel (lane-aligned 512/1024 chunks);
    # degenerates to one chunk for small hidden.
    hc = hidden
    for cand in (1024, 512):
        if hidden > cand and hidden % cand == 0:
            hc = cand
            break
    n_hidden_chunks = hidden // hc
    # TODO(synk): for E*H large enough that the bf16 weights exceed VMEM, stream
    # w1/w2 hidden-slices via BlockSpec / pltpu.emit_pipeline instead of holding
    # them fully resident.

    # x streamed as bf16 (halves input HBM bytes); output written in x.dtype.
    x2 = x.reshape(rows, embed).astype(jnp.bfloat16)
    if rows_pad != rows:
        x2 = jnp.pad(x2, ((0, rows_pad - rows), (0, 0)))

    # Weights as bf16 (halves residency / HBM weight traffic); f32 accumulation.
    w1b = w1.astype(jnp.bfloat16)
    w2b = w2.astype(jnp.bfloat16)
    b1r = b1.reshape(1, hidden).astype(jnp.float32)
    b2r = b2.reshape(1, embed).astype(jnp.float32)

    # Grid-invariant operands: single-buffer them once their double-buffered
    # footprint matters (saves half the weight VMEM on v7x at realistic E/H).
    weight_bytes = 2 * (w1b.size + w2b.size)
    bias_bytes = 4 * (b1r.size + b2r.size)
    resident_mode = (
        dict(pipeline_mode=pl.Buffered(1)) if weight_bytes > (4 << 20) else {}
    )
    weight_buf = 1 if resident_mode else 2

    # VMEM budget derived from actual buffer sizes (weights + double-buffered
    # x/out tiles + per-chunk intermediates), clamped to a range that is safe
    # on every generation (v7x physical VMEM is 64 MiB).
    tile_bytes = tm * embed * (2 + x.dtype.itemsize)       # bf16 in + out tile
    inter_bytes = tm * (hc + embed) * 4 * 2                 # h chunk + y accum
    need = (weight_buf * weight_bytes + weight_buf * bias_bytes
            + 2 * tile_bytes + inter_bytes)
    vmem_limit = int(min(max(2 * need, 32 << 20), 48 << 20))

    cost = pl.CostEstimate(
        flops=4 * rows_pad * embed * hidden,             # two matmuls, 2*M*K*N each
        transcendentals=rows_pad * (hidden + embed),     # two GELUs
        bytes_accessed=(weight_bytes + bias_bytes
                        + rows_pad * embed * 2                       # x (bf16) in
                        + rows_pad * embed * x.dtype.itemsize),      # out
    )

    kernel = functools.partial(
        _ffn_kernel,
        approximate_gelu=approximate_gelu,
        n_hidden_chunks=n_hidden_chunks,
        bf16_epilogue=bf16_epilogue,
    )

    out = pl.pallas_call(
        kernel,
        out_shape=jax.ShapeDtypeStruct((rows_pad, embed), x.dtype),
        grid_spec=pltpu.PrefetchScalarGridSpec(
            num_scalar_prefetch=0,
            grid=grid,
            in_specs=[
                pl.BlockSpec((tm, embed), lambda i: (i, 0)),    # x row tiles stream
                pl.BlockSpec((embed, hidden), lambda i: (0, 0), **resident_mode),
                pl.BlockSpec((1, hidden), lambda i: (0, 0), **resident_mode),
                pl.BlockSpec((hidden, embed), lambda i: (0, 0), **resident_mode),
                pl.BlockSpec((1, embed), lambda i: (0, 0), **resident_mode),
            ],
            out_specs=pl.BlockSpec((tm, embed), lambda i: (i, 0)),
        ),
        compiler_params=pltpu.CompilerParams(
            dimension_semantics=("parallel",),   # row tiles shard across v7x's 2 TCs
            vmem_limit_bytes=vmem_limit,
        ),
        cost_estimate=cost,
    )(x2, w1b, b1r, w2b, b2r)

    out = out[:rows]
    return out.reshape(bs, c, h, w)


def _reference(x, w1, b1, w2, b2):
    # Matches the PyTorch module in eval mode (exact-erf GELU, dropout no-op).
    bs, c, h, w = x.shape
    x2 = x.reshape(bs, c, h * w)
    t = jax.nn.gelu(x2 @ w1 + b1, approximate=False)
    t = jax.nn.gelu(t @ w2 + b2, approximate=False)
    return x + t.reshape(bs, c, h, w)


if __name__ == "__main__":
    # Small shapes consistent with the module: embed_size = h*w = 256, expansion 4.
    bs, c, h, w = 2, 4, 16, 16
    embed = h * w
    expansion = 4
    hidden = embed * expansion

    key = jax.random.PRNGKey(0)
    kx, kw1, kb1, kw2, kb2 = jax.random.split(key, 5)

    x = jax.random.normal(kx, (bs, c, h, w), dtype=jnp.float32)
    # Deterministic synthetic params (nn.Linear(embed, hidden) / (hidden, embed)).
    w1 = jax.random.normal(kw1, (embed, hidden), dtype=jnp.float32) * 0.02
    b1 = jax.random.normal(kb1, (hidden,), dtype=jnp.float32) * 0.01
    w2 = jax.random.normal(kw2, (hidden, embed), dtype=jnp.float32) * 0.02
    b2 = jax.random.normal(kb2, (embed,), dtype=jnp.float32) * 0.01

    out = feed_forward(x, w1, b1, w2, b2)
    out = jax.block_until_ready(out)

    ref = _reference(x, w1, b1, w2, b2)
    assert out.shape == (bs, c, h, w)
    # Tolerance accounts for bf16 streaming/weights (f32 accumulation) and the
    # tanh-approximate GELU fast path vs. torch's exact-erf default.
    assert jnp.allclose(out, ref, atol=2e-2, rtol=2e-2)

    print("KERNEL_OK")
</pallas_src>

<mosaic_0001>
module attributes {stable_mosaic.version = 11 : i64} {
  func.func @_ffn_kernel(%arg0: i32, %arg1: memref<8x256xbf16, #tpu.memory_space<vmem>>, %arg2: memref<256x1024xbf16, #tpu.memory_space<vmem>>, %arg3: memref<1x1024xf32, #tpu.memory_space<vmem>>, %arg4: memref<1024x256xbf16, #tpu.memory_space<vmem>>, %arg5: memref<1x256xf32, #tpu.memory_space<vmem>>, %arg6: memref<8x256xf32, #tpu.memory_space<vmem>>) attributes {dimension_semantics = [#tpu.dimension_semantics<parallel>], iteration_bounds = array<i64: 1>, scalar_prefetch = 0 : i64, scratch_operands = 0 : i64, tpu.core_type = #tpu.core_type<tc>, window_params = [{transform_indices = @transform_0, window_bounds = array<i64: 8, 256>}, {pipeline_mode = #tpu.pipeline_mode<synchronous>, transform_indices = @transform_1, window_bounds = array<i64: 256, 1024>}, {pipeline_mode = #tpu.pipeline_mode<synchronous>, transform_indices = @transform_2, window_bounds = array<i64: 1, 1024>}, {pipeline_mode = #tpu.pipeline_mode<synchronous>, transform_indices = @transform_3, window_bounds = array<i64: 1024, 256>}, {pipeline_mode = #tpu.pipeline_mode<synchronous>, transform_indices = @transform_4, window_bounds = array<i64: 1, 256>}, {transform_indices = @transform_5, window_bounds = array<i64: 8, 256>}]} {
    %c0 = arith.constant 0 : index
    %c0_0 = arith.constant 0 : index
    %0 = vector.load %arg1[%c0, %c0_0] : memref<8x256xbf16, #tpu.memory_space<vmem>>, vector<8x256xbf16>
    %cst = arith.constant 0.000000e+00 : f32
    %1 = vector.broadcast %cst : f32 to vector<8x256xf32>
    %c0_1 = arith.constant 0 : index
    %c0_2 = arith.constant 0 : index
    %2 = vector.load %arg2[%c0_1, %c0_2] : memref<256x1024xbf16, #tpu.memory_space<vmem>>, vector<256x512xbf16>
    %cst_3 = arith.constant dense<0.000000e+00> : vector<8x512xf32>
    %3 = tpu.matmul %0, %2, %cst_3 {dimension_numbers = #tpu.dot_dimension_numbers<[1], [0], [0], [1], [0, 0, 1, 1], [], []>} : vector<8x256xbf16>, vector<256x512xbf16>, vector<8x512xf32> -> vector<8x512xf32>
    %c0_4 = arith.constant 0 : index
    %c0_5 = arith.constant 0 : index
    %4 = vector.load %arg3[%c0_4, %c0_5] : memref<1x1024xf32, #tpu.memory_space<vmem>>, vector<1x512xf32>
    %5 = vector.broadcast %4 : vector<1x512xf32> to vector<8x512xf32>
    %6 = arith.addf %3, %5 : vector<8x512xf32>
    %7 = arith.truncf %6 : vector<8x512xf32> to vector<8x512xbf16>
    %8 = arith.mulf %7, %7 : vector<8x512xbf16>
    %9 = arith.mulf %7, %8 : vector<8x512xbf16>
    %cst_6 = arith.constant 4.467770e-02 : bf16
    %10 = vector.broadcast %cst_6 : bf16 to vector<8x512xbf16>
    %11 = arith.mulf %10, %9 : vector<8x512xbf16>
    %12 = arith.addf %7, %11 : vector<8x512xbf16>
    %cst_7 = arith.constant 7.968750e-01 : bf16
    %13 = vector.broadcast %cst_7 : bf16 to vector<8x512xbf16>
    %14 = arith.mulf %13, %12 : vector<8x512xbf16>
    %15 = math.tanh %14 : vector<8x512xbf16>
    %cst_8 = arith.constant 1.000000e+00 : bf16
    %16 = vector.broadcast %cst_8 : bf16 to vector<8x512xbf16>
    %17 = arith.addf %16, %15 : vector<8x512xbf16>
    %cst_9 = arith.constant 5.000000e-01 : bf16
    %18 = vector.broadcast %cst_9 : bf16 to vector<8x512xbf16>
    %19 = arith.mulf %18, %17 : vector<8x512xbf16>
    %20 = arith.mulf %7, %19 : vector<8x512xbf16>
    %c0_10 = arith.constant 0 : index
    %c0_11 = arith.constant 0 : index
    %21 = vector.load %arg4[%c0_10, %c0_11] : memref<1024x256xbf16, #tpu.memory_space<vmem>>, vector<512x256xbf16>
    %cst_12 = arith.constant dense<0.000000e+00> : vector<8x256xf32>
    %22 = tpu.matmul %20, %21, %cst_12 {dimension_numbers = #tpu.dot_dimension_numbers<[1], [0], [0], [1], [0, 0, 1, 1], [], []>} : vector<8x512xbf16>, vector<512x256xbf16>, vector<8x256xf32> -> vector<8x256xf32>
    %23 = arith.addf %1, %22 : vector<8x256xf32>
    %c0_13 = arith.constant 0 : index
    %c512 = arith.constant 512 : index
    %24 = vector.load %arg2[%c0_13, %c512] : memref<256x1024xbf16, #tpu.memory_space<vmem>>, vector<256x512xbf16>
    %cst_14 = arith.constant dense<0.000000e+00> : vector<8x512xf32>
    %25 = tpu.matmul %0, %24, %cst_14 {dimension_numbers = #tpu.dot_dimension_numbers<[1], [0], [0], [1], [0, 0, 1, 1], [], []>} : vector<8x256xbf16>, vector<256x512xbf16>, vector<8x512xf32> -> vector<8x512xf32>
    %c0_15 = arith.constant 0 : index
    %c512_16 = arith.constant 512 : index
    %26 = vector.load %arg3[%c0_15, %c512_16] : memref<1x1024xf32, #tpu.memory_space<vmem>>, vector<1x512xf32>
    %27 = vector.broadcast %26 : vector<1x512xf32> to vector<8x512xf32>
    %28 = arith.addf %25, %27 : vector<8x512xf32>
    %29 = arith.truncf %28 : vector<8x512xf32> to vector<8x512xbf16>
    %30 = arith.mulf %29, %29 : vector<8x512xbf16>
    %31 = arith.mulf %29, %30 : vector<8x512xbf16>
    %cst_17 = arith.constant 4.467770e-02 : bf16
    %32 = vector.broadcast %cst_17 : bf16 to vector<8x512xbf16>
    %33 = arith.mulf %32, %31 : vector<8x512xbf16>
    %34 = arith.addf %29, %33 : vector<8x512xbf16>
    %cst_18 = arith.constant 7.968750e-01 : bf16
    %35 = vector.broadcast %cst_18 : bf16 to vector<8x512xbf16>
    %36 = arith.mulf %35, %34 : vector<8x512xbf16>
    %37 = math.tanh %36 : vector<8x512xbf16>
    %cst_19 = arith.constant 1.000000e+00 : bf16
    %38 = vector.broadcast %cst_19 : bf16 to vector<8x512xbf16>
    %39 = arith.addf %38, %37 : vector<8x512xbf16>
    %cst_20 = arith.constant 5.000000e-01 : bf16
    %40 = vector.broadcast %cst_20 : bf16 to vector<8x512xbf16>
    %41 = arith.mulf %40, %39 : vector<8x512xbf16>
    %42 = arith.mulf %29, %41 : vector<8x512xbf16>
    %c512_21 = arith.constant 512 : index
    %c0_22 = arith.constant 0 : index
    %43 = vector.load %arg4[%c512_21, %c0_22] : memref<1024x256xbf16, #tpu.memory_space<vmem>>, vector<512x256xbf16>
    %cst_23 = arith.constant dense<0.000000e+00> : vector<8x256xf32>
    %44 = tpu.matmul %42, %43, %cst_23 {dimension_numbers = #tpu.dot_dimension_numbers<[1], [0], [0], [1], [0, 0, 1, 1], [], []>} : vector<8x512xbf16>, vector<512x256xbf16>, vector<8x256xf32> -> vector<8x256xf32>
    %45 = arith.addf %23, %44 : vector<8x256xf32>
    %c0_24 = arith.constant 0 : index
    %c0_25 = arith.constant 0 : index
    %46 = vector.load %arg5[%c0_24, %c0_25] : memref<1x256xf32, #tpu.memory_space<vmem>>, vector<1x256xf32>
    %47 = vector.broadcast %46 : vector<1x256xf32> to vector<8x256xf32>
    %48 = arith.addf %45, %47 : vector<8x256xf32>
    %49 = arith.mulf %48, %48 : vector<8x256xf32>
    %50 = arith.mulf %48, %49 : vector<8x256xf32>
    %cst_26 = arith.constant 4.471500e-02 : f32
    %51 = vector.broadcast %cst_26 : f32 to vector<8x256xf32>
    %52 = arith.mulf %51, %50 : vector<8x256xf32>
    %53 = arith.addf %48, %52 : vector<8x256xf32>
    %cst_27 = arith.constant 0.797884583 : f32
    %54 = vector.broadcast %cst_27 : f32 to vector<8x256xf32>
    %55 = arith.mulf %54, %53 : vector<8x256xf32>
    %56 = math.tanh %55 : vector<8x256xf32>
    %cst_28 = arith.constant 1.000000e+00 : f32
    %57 = vector.broadcast %cst_28 : f32 to vector<8x256xf32>
    %58 = arith.addf %57, %56 : vector<8x256xf32>
    %cst_29 = arith.constant 5.000000e-01 : f32
    %59 = vector.broadcast %cst_29 : f32 to vector<8x256xf32>
    %60 = arith.mulf %59, %58 : vector<8x256xf32>
    %61 = arith.mulf %48, %60 : vector<8x256xf32>
    %62 = arith.extf %0 : vector<8x256xbf16> to vector<8x256xf32>
    %63 = arith.addf %62, %61 : vector<8x256xf32>
    %c0_30 = arith.constant 0 : index
    %c0_31 = arith.constant 0 : index
    %64 = vector.load %arg6[%c0_30, %c0_31] : memref<8x256xf32, #tpu.memory_space<vmem>>, vector<8x256xf32>
    tpu.vector_store %arg6[%c0_30, %c0_31], %63 {strides = array<i32>} : memref<8x256xf32, #tpu.memory_space<vmem>>, vector<8x256xf32>,
    return
  }
  func.func @transform_0(%arg0: i32) -> (i32, i32) {
    %c0_i32 = arith.constant 0 : i32
    %c0_i32_0 = arith.constant 0 : i32
    return %arg0, %c0_i32 : i32, i32
  }
  func.func @transform_1(%arg0: i32) -> (i32, i32) {
    %c0_i32 = arith.constant 0 : i32
    %c0_i32_0 = arith.constant 0 : i32
    %c0_i32_1 = arith.constant 0 : i32
    return %c0_i32, %c0_i32_0 : i32, i32
  }
  func.func @transform_2(%arg0: i32) -> (i32, i32) {
    %c0_i32 = arith.constant 0 : i32
    %c0_i32_0 = arith.constant 0 : i32
    %c0_i32_1 = arith.constant 0 : i32
    return %c0_i32, %c0_i32_0 : i32, i32
  }
  func.func @transform_3(%arg0: i32) -> (i32, i32) {
    %c0_i32 = arith.constant 0 : i32
    %c0_i32_0 = arith.constant 0 : i32
    %c0_i32_1 = arith.constant 0 : i32
    return %c0_i32, %c0_i32_0 : i32, i32
  }
  func.func @transform_4(%arg0: i32) -> (i32, i32) {
    %c0_i32 = arith.constant 0 : i32
    %c0_i32_0 = arith.constant 0 : i32
    %c0_i32_1 = arith.constant 0 : i32
    return %c0_i32, %c0_i32_0 : i32, i32
  }
  func.func @transform_5(%arg0: i32) -> (i32, i32) {
    %c0_i32 = arith.constant 0 : i32
    %c0_i32_0 = arith.constant 0 : i32
    return %arg0, %c0_i32 : i32, i32
  }
}

</mosaic_0001>

<bundles_post_ra>
// kernel: feed_forward.1
= control target key start
LH: loop header
LB: loop body
LE: loop exit
PB: predicated region body
PF: predicated region fallthrough
CT: control target
= control target key end

     0   :  { %s5229_s1 = inlined_call_operand.vmem [shape: bf16[256,1024], index: 1, kind: input, shape index: {}]   ;;  %s5230_s0 = inlined_call_operand.vmem [shape: bf16[8,256], index: 0, kind: input, shape index: {}]   ;;  %s5231_s2 = inlined_call_operand.vmem [shape: f32[1,1024], index: 2, kind: input, shape index: {}]   ;;  %s5232_s3 = inlined_call_operand.vmem [shape: bf16[1024,256], index: 3, kind: input, shape index: {}]   ;;  %s5233_s4 = inlined_call_operand.vmem [shape: f32[1,256], index: 4, kind: input, shape index: {}]   ;;  %s5234_s5 = inlined_call_operand.vmem [shape: f32[8,256], index: 5, kind: output, shape index: {}]  }
   0x1   :  { %v2338_v0 = vld [vmem:[%s5229_s1 + $0x1c0] sm:$0xf]  ;;  %v3276_v5 = vld [vmem:[%s5229_s1 + $0x1c4] sm:$0xf] }
   0x2   :  { %v3278_v1 = vld [vmem:[%s5229_s1 + $0x1dc] sm:$0xf0]  ;;  %v2340_v6 = vld [vmem:[%s5229_s1 + $0x1e0] sm:$0xf0] }
   0x3   :  { %v2466_v2 = vld [vmem:[%s5229_s1 + $0x3c0] sm:$0xf]  ;;  %v2339_v3 = vor.u32 %v3278_v1, %v2338_v0  ;;  %v2343_v8 = vor.u32 %v3276_v5, %v2340_v6  ;;  %v3308_v9 = vld [vmem:[%s5229_s1 + $0x3c4] sm:$0xf] }
   0x4   :  { %v3310_v4 = vld [vmem:[%s5229_s1 + $0x3dc] sm:$0xf0]  ;;  %v2468_v10 = vld [vmem:[%s5229_s1 + $0x3e0] sm:$0xf0] }
   0x5   :  { %v2467_v7 = vor.u32 %v3310_v4, %v2466_v2  ;;  %v2322_v11 = vld [vmem:[%s5229_s1 + $0x180] sm:$0xf]  ;;  %422 = vmatpush.bf16.msra.mxu0 %v2339_v3  ;;  %v2471_v12 = vor.u32 %v3308_v9, %v2468_v10  ;;  %448 = vmatpush.bf16.msra.mxu2 %v2343_v8  ;;  %v3272_v18 = vld [vmem:[%s5229_s1 + $0x184] sm:$0xf] }
   0x6   :  { %v3274_v13 = vld [vmem:[%s5229_s1 + $0x19c] sm:$0xf0]  ;;  %v2324_v19 = vld [vmem:[%s5229_s1 + $0x1a0] sm:$0xf0] }
   0x7   :  { %v2450_v14 = vld [vmem:[%s5229_s1 + $0x380] sm:$0xf]  ;;  %435 = vmatpush.bf16.msra.mxu1 %v2467_v7  ;;  %v2323_v16 = vor.u32 %v3274_v13, %v2322_v11  ;;  %v3304_v20 = vld [vmem:[%s5229_s1 + $0x384] sm:$0xf]  ;;  %461 = vmatpush.bf16.msra.mxu3 %v2471_v12  ;;  %v2327_v21 = vor.u32 %v3272_v18, %v2324_v19 }
   0x8   :  { %v3306_v15 = vld [vmem:[%s5229_s1 + $0x39c] sm:$0xf0]  ;;  %v2452_v22 = vld [vmem:[%s5229_s1 + $0x3a0] sm:$0xf0] }
   0x9   :  { %v2451_v17 = vor.u32 %v3306_v15, %v2450_v14  ;;  %v2306_v23 = vld [vmem:[%s5229_s1 + $0x140] sm:$0xf]  ;;  %v2455_v25 = vor.u32 %v3304_v20, %v2452_v22  ;;  %v3268_v28 = vld [vmem:[%s5229_s1 + $0x144] sm:$0xf]  ;;  %423 = vmatpush.bf16.msra.mxu0 %v2323_v16  ;;  %449 = vmatpush.bf16.msra.mxu2 %v2327_v21 }
   0xa   :  { %v3270_v24 = vld [vmem:[%s5229_s1 + $0x15c] sm:$0xf0]  ;;  %v2308_v30 = vld [vmem:[%s5229_s1 + $0x160] sm:$0xf0] }
   0xb   :  { %v2434_v26 = vld [vmem:[%s5229_s1 + $0x340] sm:$0xf]  ;;  %v2307_v29 = vor.u32 %v3270_v24, %v2306_v23  ;;  %v3300_v31 = vld [vmem:[%s5229_s1 + $0x344] sm:$0xf]  ;;  %436 = vmatpush.bf16.msra.mxu1 %v2451_v17  ;;  %v2311_v34 = vor.u32 %v3268_v28, %v2308_v30  ;;  %462 = vmatpush.bf16.msra.mxu3 %v2455_v25  ;;  %v3279_v30 = vld [vmem:[%s5229_s1 + $0x1e4] sm:$0xf0] }
   0xc   :  { %v3302_v27 = vld [vmem:[%s5229_s1 + $0x35c] sm:$0xf0]  ;;  %v2436_v32 = vld [vmem:[%s5229_s1 + $0x360] sm:$0xf0] }
   0xd   :  { %v2435_v33 = vor.u32 %v3302_v27, %v2434_v26  ;;  %v2290_v35 = vld [vmem:[%s5229_s1 + $0x100] sm:$0xf]  ;;  %v2439_v38 = vor.u32 %v3300_v31, %v2436_v32  ;;  %v3264_v40 = vld [vmem:[%s5229_s1 + $0x104] sm:$0xf]  ;;  %424 = vmatpush.bf16.msra.mxu0 %v2307_v29  ;;  %450 = vmatpush.bf16.msra.mxu2 %v2311_v34  ;;  %v2346_v29 = vld [vmem:[%s5229_s1 + $0x1c8] sm:$0xf] }
   0xe   :  { %v3266_v36 = vld [vmem:[%s5229_s1 + $0x11c] sm:$0xf0]  ;;  %v2292_v41 = vld [vmem:[%s5229_s1 + $0x120] sm:$0xf0]  ;;  %v2474_v31 = vld [vmem:[%s5229_s1 + $0x3c8] sm:$0xf] }
   0xf   :  { %v2418_v37 = vld [vmem:[%s5229_s1 + $0x300] sm:$0xf]  ;;  %v3296_v42 = vld [vmem:[%s5229_s1 + $0x304] sm:$0xf]  ;;  %v2291_v44 = vor.u32 %v3266_v36, %v2290_v35  ;;  %437 = vmatpush.bf16.msra.mxu1 %v2435_v33  ;;  %v2295_v46 = vor.u32 %v3264_v40, %v2292_v41  ;;  %463 = vmatpush.bf16.msra.mxu3 %v2439_v38  ;;  %v3311_v33 = vld [vmem:[%s5229_s1 + $0x3e4] sm:$0xf0] }
  0x10   :  { %v3298_v39 = vld [vmem:[%s5229_s1 + $0x31c] sm:$0xf0]  ;;  %v2420_v43 = vld [vmem:[%s5229_s1 + $0x320] sm:$0xf0]  ;;  %v3277_v34 = vld [vmem:[%s5229_s1 + $0x1cc] sm:$0xf] }
  0x11   :  { %v2419_v45 = vor.u32 %v3298_v39, %v2418_v37  ;;  %v2274_v47 = vld [vmem:[%s5229_s1 + $0xc0] sm:$0xf]  ;;  %v2423_v50 = vor.u32 %v3296_v42, %v2420_v43  ;;  %v3260_v52 = vld [vmem:[%s5229_s1 + $0xc4] sm:$0xf]  ;;  %425 = vmatpush.bf16.msra.mxu0 %v2291_v44  ;;  %451 = vmatpush.bf16.msra.mxu2 %v2295_v46  ;;  %v2348_v35 = vld [vmem:[%s5229_s1 + $0x1e8] sm:$0xf0]  ;;  %v2347_v43 = vor.u32 %v3279_v30, %v2346_v29 }
  0x12   :  { %v3262_v48 = vld [vmem:[%s5229_s1 + $0xdc] sm:$0xf0]  ;;  %v2276_v53 = vld [vmem:[%s5229_s1 + $0xe0] sm:$0xf0]  ;;  %v3309_v39 = vld [vmem:[%s5229_s1 + $0x3cc] sm:$0xf]  ;;  %v2475_v44 = vor.u32 %v3311_v33, %v2474_v31 }
  0x13   :  { %v2402_v49 = vld [vmem:[%s5229_s1 + $0x2c0] sm:$0xf]  ;;  %v3292_v54 = vld [vmem:[%s5229_s1 + $0x2c4] sm:$0xf]  ;;  %v2275_v56 = vor.u32 %v3262_v48, %v2274_v47  ;;  %438 = vmatpush.bf16.msra.mxu1 %v2419_v45  ;;  %v2279_v58 = vor.u32 %v3260_v52, %v2276_v53  ;;  %464 = vmatpush.bf16.msra.mxu3 %v2423_v50  ;;  %v2476_v40 = vld [vmem:[%s5229_s1 + $0x3e8] sm:$0xf0]  ;;  %v2351_v45 = vor.u32 %v3277_v34, %v2348_v35 }
  0x14   :  { %v3294_v51 = vld [vmem:[%s5229_s1 + $0x2dc] sm:$0xf0]  ;;  %v2404_v55 = vld [vmem:[%s5229_s1 + $0x2e0] sm:$0xf0]  ;;  %v2330_v46 = vld [vmem:[%s5229_s1 + $0x188] sm:$0xf] }
  0x15   :  { %v2403_v57 = vor.u32 %v3294_v51, %v2402_v49  ;;  %v2258_v59 = vld [vmem:[%s5229_s1 + $0x80] sm:$0xf]  ;;  %v2407_v62 = vor.u32 %v3292_v54, %v2404_v55  ;;  %v3256_v0 = vld [vmem:[%s5229_s1 + $0x84] sm:$0xf]  ;;  %426 = vmatpush.bf16.msra.mxu0 %v2275_v56  ;;  %452 = vmatpush.bf16.msra.mxu2 %v2279_v58  ;;  %v3275_v47 = vld [vmem:[%s5229_s1 + $0x1a4] sm:$0xf0]  ;;  %v2479_v49 = vor.u32 %v3309_v39, %v2476_v40 }
  0x16   :  { %v3258_v60 = vld [vmem:[%s5229_s1 + $0x9c] sm:$0xf0]  ;;  %v2260_v1 = vld [vmem:[%s5229_s1 + $0xa0] sm:$0xf0]  ;;  %v2458_v48 = vld [vmem:[%s5229_s1 + $0x388] sm:$0xf] }
  0x17   :  { %v2386_v61 = vld [vmem:[%s5229_s1 + $0x280] sm:$0xf]  ;;  %v3288_v2 = vld [vmem:[%s5229_s1 + $0x284] sm:$0xf]  ;;  %v2259_v4 = vor.u32 %v3258_v60, %v2258_v59  ;;  %439 = vmatpush.bf16.msra.mxu1 %v2403_v57  ;;  %v2263_v6 = vor.u32 %v3256_v0, %v2260_v1  ;;  %465 = vmatpush.bf16.msra.mxu3 %v2407_v62  ;;  %v3307_v51 = vld [vmem:[%s5229_s1 + $0x3a4] sm:$0xf0]  ;;  %v2331_v57 = vor.u32 %v3275_v47, %v2330_v46 }
  0x18   :  { %v3290_v63 = vld [vmem:[%s5229_s1 + $0x29c] sm:$0xf0]  ;;  %v2388_v3 = vld [vmem:[%s5229_s1 + $0x2a0] sm:$0xf0]  ;;  %v3273_v52 = vld [vmem:[%s5229_s1 + $0x18c] sm:$0xf]  ;;  %v2459_v58 = vor.u32 %v3307_v51, %v2458_v48 }
  0x19   :  { %v2387_v5 = vor.u32 %v3290_v63, %v2386_v61  ;;  %v2242_v7 = vld [vmem:[%s5229_s1 + $0x40] sm:$0xf]  ;;  %v2391_v10 = vor.u32 %v3288_v2, %v2388_v3  ;;  %v3252_v12 = vld [vmem:[%s5229_s1 + $0x44] sm:$0xf]  ;;  %427 = vmatpush.bf16.msra.mxu0 %v2259_v4  ;;  %453 = vmatpush.bf16.msra.mxu2 %v2263_v6  ;;  %v2332_v53 = vld [vmem:[%s5229_s1 + $0x1a8] sm:$0xf0] }
  0x1a   :  { %v3254_v8 = vld [vmem:[%s5229_s1 + $0x5c] sm:$0xf0]  ;;  %v2244_v13 = vld [vmem:[%s5229_s1 + $0x60] sm:$0xf0]  ;;  %v3305_v55 = vld [vmem:[%s5229_s1 + $0x38c] sm:$0xf]  ;;  %v2335_v59 = vor.u32 %v3273_v52, %v2332_v53 }
  0x1b   :  { %v2370_v9 = vld [vmem:[%s5229_s1 + $0x240] sm:$0xf]  ;;  %v3284_v14 = vld [vmem:[%s5229_s1 + $0x244] sm:$0xf]  ;;  %v2243_v16 = vor.u32 %v3254_v8, %v2242_v7  ;;  %440 = vmatpush.bf16.msra.mxu1 %v2387_v5  ;;  %v2247_v21 = vor.u32 %v3252_v12, %v2244_v13  ;;  %466 = vmatpush.bf16.msra.mxu3 %v2391_v10  ;;  %v2460_v56 = vld [vmem:[%s5229_s1 + $0x3a8] sm:$0xf0] }
  0x1c   :  { %v3286_v11 = vld [vmem:[%s5229_s1 + $0x25c] sm:$0xf0]  ;;  %v2372_v15 = vld [vmem:[%s5229_s1 + $0x260] sm:$0xf0]  ;;  %v2314_v60 = vld [vmem:[%s5229_s1 + $0x148] sm:$0xf]  ;;  %v2463_v63 = vor.u32 %v3305_v55, %v2460_v56 }
  0x1d   :  { %v2226_v17 = vld [vmem:[%s5229_s1] sm:$0xf]  ;;  %v2371_v20 = vor.u32 %v3286_v11, %v2370_v9  ;;  %v3248_v23 = vld [vmem:[%s5229_s1 + $0x4] sm:$0xf]  ;;  %v2375_v25 = vor.u32 %v3284_v14, %v2372_v15  ;;  %428 = vmatpush.bf16.msra.mxu0 %v2243_v16  ;;  %454 = vmatpush.bf16.msra.mxu2 %v2247_v21  ;;  %v3271_v61 = vld [vmem:[%s5229_s1 + $0x164] sm:$0xf0] }
  0x1e   :  { %v3250_v18 = vld [vmem:[%s5229_s1 + $0x1c] sm:$0xf0]  ;;  %v2228_v26 = vld [vmem:[%s5229_s1 + $0x20] sm:$0xf0]  ;;  %v2442_v62 = vld [vmem:[%s5229_s1 + $0x348] sm:$0xf]  ;;  %v2315_v5 = vor.u32 %v3271_v61, %v2314_v60 }
  0x1f   :  { %v2354_v19 = vld [vmem:[%s5229_s1 + $0x200] sm:$0xf]  ;;  %v3280_v27 = vld [vmem:[%s5229_s1 + $0x204] sm:$0xf]  ;;  %v2227_v32 = vor.u32 %v3250_v18, %v2226_v17  ;;  %441 = vmatpush.bf16.msra.mxu1 %v2371_v20  ;;  %v2231_v38 = vor.u32 %v3248_v23, %v2228_v26  ;;  %467 = vmatpush.bf16.msra.mxu3 %v2375_v25  ;;  %v3303_v0 = vld [vmem:[%s5229_s1 + $0x364] sm:$0xf0] }
  0x20   :  { %v3282_v22 = vld [vmem:[%s5229_s1 + $0x21c] sm:$0xf0]  ;;  %v2356_v28 = vld [vmem:[%s5229_s1 + $0x220] sm:$0xf0]  ;;  %v3269_v1 = vld [vmem:[%s5229_s1 + $0x14c] sm:$0xf]  ;;  %v2443_v6 = vor.u32 %v3303_v0, %v2442_v62 }
  0x21   :  { %v20_v24 = vld [vmem:[%s5230_s0] sm:$0xff]  ;;  %v2355_v37 = vor.u32 %v3282_v22, %v2354_v19  ;;  %v2359_v42 = vor.u32 %v3280_v27, %v2356_v28  ;;  %429 = vmatpush.bf16.msra.mxu0 %v2227_v32  ;;  %455 = vmatpush.bf16.msra.mxu2 %v2231_v38  ;;  %v2316_v2 = vld [vmem:[%s5229_s1 + $0x168] sm:$0xf0]  ;;  %v2298_v8 = vld [vmem:[%s5229_s1 + $0x108] sm:$0xf] }
  0x22   :  { %v96_v36 = vunpack.c.l.b16 %v20_v24  ;;  %v97_v41 = vunpack.c.h.b16 %v20_v24  ;;  %v3301_v3 = vld [vmem:[%s5229_s1 + $0x34c] sm:$0xf]  ;;  %v2319_v7 = vor.u32 %v3269_v1, %v2316_v2  ;;  %v3267_v9 = vld [vmem:[%s5229_s1 + $0x124] sm:$0xf0] }
  0x23   :  { %442 = vmatpush.bf16.msra.mxu1 %v2355_v37  ;;  %468 = vmatpush.bf16.msra.mxu3 %v2359_v42  ;;  %v2444_v4 = vld [vmem:[%s5229_s1 + $0x368] sm:$0xf0]  ;;  %v2426_v10 = vld [vmem:[%s5229_s1 + $0x308] sm:$0xf]  ;;  %v2299_v17 = vor.u32 %v3267_v9, %v2298_v8  ;;  %v3404_v8 = vld [vmem:[%s5229_s1 + $0x1d4] sm:$0xf] }
  0x24   :  { %v3783_v50 = vpack.c.b16 %v96_v36, %v96_v36  ;;  %v3794_v54 = vpack.c.b16 %v97_v41, %v97_v41  ;;  %v2447_v11 = vor.u32 %v3301_v3, %v2444_v4  ;;  %v3299_v12 = vld [vmem:[%s5229_s1 + $0x324] sm:$0xf0]  ;;  %v3265_v13 = vld [vmem:[%s5229_s1 + $0x10c] sm:$0xf]  ;;  %v2594_v3 = vld [vmem:[%s5229_s1 + $0x1d0] sm:$0xf] }
  0x25   :  { %474 = vmatpush.bf16.msrb.mxu0 %v2347_v43  ;;  %500 = vmatpush.bf16.msrb.mxu2 %v2351_v45  ;;  %v2300_v14 = vld [vmem:[%s5229_s1 + $0x128] sm:$0xf0]  ;;  %v2427_v18 = vor.u32 %v3299_v12, %v2426_v10  ;;  %v2282_v20 = vld [vmem:[%s5229_s1 + $0xc8] sm:$0xf]  ;;  %v3406_v4 = vld [vmem:[%s5229_s1 + $0x1ec] sm:$0xf0] }
  0x26   :  { %456 = vmatmul.bf16.vlgmr.msra.gmra.mxu2 %v3783_v50  ;;  %469 = vmatmul.bf16.vlgmr.msra.gmra.mxu3 %v3794_v54  ;;  %v3297_v15 = vld [vmem:[%s5229_s1 + $0x30c] sm:$0xf]  ;;  %v2303_v19 = vor.u32 %v3265_v13, %v2300_v14  ;;  %v3263_v21 = vld [vmem:[%s5229_s1 + $0xe4] sm:$0xf0]  ;;  %v2596_v9 = vld [vmem:[%s5229_s1 + $0x1f0] sm:$0xf0] }
  0x27   :  { %487 = vmatpush.bf16.msrb.mxu1 %v2475_v44  ;;  %513 = vmatpush.bf16.msrb.mxu3 %v2479_v49  ;;  %v2428_v16 = vld [vmem:[%s5229_s1 + $0x328] sm:$0xf0]  ;;  %v2410_v22 = vld [vmem:[%s5229_s1 + $0x2c8] sm:$0xf]  ;;  %v2283_v29 = vor.u32 %v3263_v21, %v2282_v20  ;;  %v3436_v12 = vld [vmem:[%s5229_s1 + $0x3d4] sm:$0xf] }
  0x28   :  { %430 = vmatmul.bf16.vlgmr.msra.gmra.mxu0 %v3783_v50  ;;  %443 = vmatmul.bf16.vlgmr.msra.gmra.mxu1 %v3794_v54  ;;  %v2431_v23 = vor.u32 %v3297_v15, %v2428_v16  ;;  %v3295_v24 = vld [vmem:[%s5229_s1 + $0x2e4] sm:$0xf0]  ;;  %v3261_v25 = vld [vmem:[%s5229_s1 + $0xcc] sm:$0xf]  ;;  %v2724_v13 = vld [vmem:[%s5229_s1 + $0x3f0] sm:$0xf0]  ;;  %v2595_v15 = vor.u32 %v3406_v4, %v2594_v3 }
  0x29   :  { %475 = vmatpush.bf16.msrb.mxu0 %v2331_v57  ;;  %501 = vmatpush.bf16.msrb.mxu2 %v2335_v59  ;;  %v2284_v26 = vld [vmem:[%s5229_s1 + $0xe8] sm:$0xf0]  ;;  %v2411_v30 = vor.u32 %v3295_v24, %v2410_v22  ;;  %v2266_v32 = vld [vmem:[%s5229_s1 + $0x88] sm:$0xf]  ;;  %v2706_v20 = vld [vmem:[%s5229_s1 + $0x390] sm:$0xf]  ;;  %v2727_v21 = vor.u32 %v3436_v12, %v2724_v13 }
  0x2a   :  { %v3293_v27 = vld [vmem:[%s5229_s1 + $0x2cc] sm:$0xf]  ;;  %v2287_v31 = vor.u32 %v3261_v25, %v2284_v26  ;;  %v3259_v33 = vld [vmem:[%s5229_s1 + $0xa4] sm:$0xf0]  ;;  %v3434_v22 = vld [vmem:[%s5229_s1 + $0x3ac] sm:$0xf0] }
  0x2b   :  { %488 = vmatpush.bf16.msrb.mxu1 %v2459_v58  ;;  %514 = vmatpush.bf16.msrb.mxu3 %v2463_v63  ;;  %v2412_v28 = vld [vmem:[%s5229_s1 + $0x2e8] sm:$0xf0]  ;;  %v2394_v34 = vld [vmem:[%s5229_s1 + $0x288] sm:$0xf]  ;;  %v2267_v41 = vor.u32 %v3259_v33, %v2266_v32  ;;  %v2580_v24 = vld [vmem:[%s5229_s1 + $0x1b0] sm:$0xf0] }
  0x2c   :  { %v2415_v35 = vor.u32 %v3293_v27, %v2412_v28  ;;  %v3291_v36 = vld [vmem:[%s5229_s1 + $0x2a4] sm:$0xf0]  ;;  %v3257_v37 = vld [vmem:[%s5229_s1 + $0x8c] sm:$0xf]  ;;  %v3432_v25 = vld [vmem:[%s5229_s1 + $0x394] sm:$0xf]  ;;  %v2707_v28 = vor.u32 %v3434_v22, %v2706_v20 }
  0x2d   :  { %476 = vmatpush.bf16.msrb.mxu0 %v2315_v5  ;;  %502 = vmatpush.bf16.msrb.mxu2 %v2319_v7  ;;  %v2268_v38 = vld [vmem:[%s5229_s1 + $0xa8] sm:$0xf0]  ;;  %v2395_v42 = vor.u32 %v3291_v36, %v2394_v34  ;;  %v2250_v44 = vld [vmem:[%s5229_s1 + $0x48] sm:$0xf]  ;;  %v2722_v5 = vld [vmem:[%s5229_s1 + $0x3d0] sm:$0xf] }
  0x2e   :  { %v3289_v39 = vld [vmem:[%s5229_s1 + $0x28c] sm:$0xf]  ;;  %v2271_v43 = vor.u32 %v3257_v37, %v2268_v38  ;;  %v3255_v45 = vld [vmem:[%s5229_s1 + $0x64] sm:$0xf0]  ;;  %v3438_v7 = vld [vmem:[%s5229_s1 + $0x3ec] sm:$0xf0] }
  0x2f   :  { %489 = vmatpush.bf16.msrb.mxu1 %v2443_v6  ;;  %515 = vmatpush.bf16.msrb.mxu3 %v2447_v11  ;;  %v2396_v40 = vld [vmem:[%s5229_s1 + $0x2a8] sm:$0xf0]  ;;  %v2378_v46 = vld [vmem:[%s5229_s1 + $0x248] sm:$0xf]  ;;  %v2251_v55 = vor.u32 %v3255_v45, %v2250_v44  ;;  %v2723_v16 = vor.u32 %v3438_v7, %v2722_v5  ;;  %v2708_v26 = vld [vmem:[%s5229_s1 + $0x3b0] sm:$0xf0] }
  0x30   :  { %v2399_v47 = vor.u32 %v3289_v39, %v2396_v40  ;;  %v3287_v48 = vld [vmem:[%s5229_s1 + $0x264] sm:$0xf0]  ;;  %v3253_v49 = vld [vmem:[%s5229_s1 + $0x4c] sm:$0xf]  ;;  %v2690_v32 = vld [vmem:[%s5229_s1 + $0x350] sm:$0xf]  ;;  %v2711_v33 = vor.u32 %v3432_v25, %v2708_v26 }
  0x31   :  { %477 = vmatpush.bf16.msrb.mxu0 %v2299_v17  ;;  %503 = vmatpush.bf16.msrb.mxu2 %v2303_v19  ;;  %v2252_v51 = vld [vmem:[%s5229_s1 + $0x68] sm:$0xf0]  ;;  %v2234_v56 = vld [vmem:[%s5229_s1 + $0x8] sm:$0xf]  ;;  %v2379_v58 = vor.u32 %v3287_v48, %v2378_v46  ;;  %v2599_v17 = vor.u32 %v3404_v8, %v2596_v9  ;;  %v3402_v19 = vld [vmem:[%s5229_s1 + $0x1ac] sm:$0xf0] }
  0x32   :  { %v3285_v52 = vld [vmem:[%s5229_s1 + $0x24c] sm:$0xf]  ;;  %v3251_v57 = vld [vmem:[%s5229_s1 + $0x24] sm:$0xf0]  ;;  %v2255_v59 = vor.u32 %v3253_v49, %v2252_v51  ;;  %v3430_v34 = vld [vmem:[%s5229_s1 + $0x36c] sm:$0xf0] }
  0x33   :  { %490 = vmatpush.bf16.msrb.mxu1 %v2427_v18  ;;  %516 = vmatpush.bf16.msrb.mxu3 %v2431_v23  ;;  %v2380_v53 = vld [vmem:[%s5229_s1 + $0x268] sm:$0xf0]  ;;  %v2362_v60 = vld [vmem:[%s5229_s1 + $0x208] sm:$0xf]  ;;  %v2235_v6 = vor.u32 %v3251_v57, %v2234_v56  ;;  %v2578_v18 = vld [vmem:[%s5229_s1 + $0x190] sm:$0xf]  ;;  %v2691_v40 = vor.u32 %v3430_v34, %v2690_v32 }
  0x34   :  { %v3283_v61 = vld [vmem:[%s5229_s1 + $0x224] sm:$0xf0]  ;;  %v3249_v62 = vld [vmem:[%s5229_s1 + $0xc] sm:$0xf]  ;;  %v2383_v63 = vor.u32 %v3285_v52, %v2380_v53  ;;  %v3400_v23 = vld [vmem:[%s5229_s1 + $0x194] sm:$0xf]  ;;  %v2579_v27 = vor.u32 %v3402_v19, %v2578_v18 }
  0x35   :  { %478 = vmatpush.bf16.msrb.mxu0 %v2283_v29  ;;  %504 = vmatpush.bf16.msrb.mxu2 %v2287_v31  ;;  %v2236_v0 = vld [vmem:[%s5229_s1 + $0x28] sm:$0xf0]  ;;  %v2363_v10 = vor.u32 %v3283_v61, %v2362_v60  ;;  %v2583_v29 = vor.u32 %v3400_v23, %v2580_v24  ;;  %v3398_v31 = vld [vmem:[%s5229_s1 + $0x16c] sm:$0xf0]  ;;  %v2564_v36 = vld [vmem:[%s5229_s1 + $0x170] sm:$0xf0] }
  0x36   :  { %v3281_v1 = vld [vmem:[%s5229_s1 + $0x20c] sm:$0xf]  ;;  %v2239_v11 = vor.u32 %v3249_v62, %v2236_v0  ;;  %v3428_v37 = vld [vmem:[%s5229_s1 + $0x354] sm:$0xf]  ;;  %v2674_v44 = vld [vmem:[%s5229_s1 + $0x310] sm:$0xf] }
  0x37   :  { %491 = vmatpush.bf16.msrb.mxu1 %v2411_v30  ;;  %517 = vmatpush.bf16.msrb.mxu3 %v2415_v35  ;;  %v2364_v2 = vld [vmem:[%s5229_s1 + $0x228] sm:$0xf0]  ;;  %v2562_v30 = vld [vmem:[%s5229_s1 + $0x150] sm:$0xf]  ;;  %v3396_v35 = vld [vmem:[%s5229_s1 + $0x154] sm:$0xf] }
  0x38   :  { %v2367_v14 = vor.u32 %v3281_v1, %v2364_v2  ;;  %v2692_v38 = vld [vmem:[%s5229_s1 + $0x370] sm:$0xf0]  ;;  %v2563_v39 = vor.u32 %v3398_v31, %v2562_v30  ;;  %v3426_v46 = vld [vmem:[%s5229_s1 + $0x32c] sm:$0xf0] }
  0x39   :  { %479 = vmatpush.bf16.msrb.mxu0 %v2267_v41  ;;  %505 = vmatpush.bf16.msrb.mxu2 %v2271_v43  ;;  %v2567_v41 = vor.u32 %v3396_v35, %v2564_v36  ;;  %v3394_v43 = vld [vmem:[%s5229_s1 + $0x12c] sm:$0xf0]  ;;  %v2695_v45 = vor.u32 %v3428_v37, %v2692_v38  ;;  %v2548_v48 = vld [vmem:[%s5229_s1 + $0x130] sm:$0xf0]  ;;  %v2675_v53 = vor.u32 %v3426_v46, %v2674_v44  ;;  %v2602_v37 = vld [vmem:[%s5229_s1 + $0x1d8] sm:$0xf] }
  0x3a   :  { %v3424_v49 = vld [vmem:[%s5229_s1 + $0x314] sm:$0xf]  ;;  %v2530_v56 = vld [vmem:[%s5229_s1 + $0xd0] sm:$0xf]  ;;  %v3407_v38 = vld [vmem:[%s5229_s1 + $0x1f4] sm:$0xf0] }
  0x3b   :  { %492 = vmatpush.bf16.msrb.mxu1 %v2395_v42  ;;  %518 = vmatpush.bf16.msrb.mxu3 %v2399_v47  ;;  %v2546_v42 = vld [vmem:[%s5229_s1 + $0x110] sm:$0xf]  ;;  %v3392_v47 = vld [vmem:[%s5229_s1 + $0x114] sm:$0xf]  ;;  %v3437_v46 = vld [vmem:[%s5229_s1 + $0x3dc] sm:$0xf] }
  0x3c   :  { %v2676_v51 = vld [vmem:[%s5229_s1 + $0x330] sm:$0xf0]  ;;  %v2547_v52 = vor.u32 %v3394_v43, %v2546_v42  ;;  %v3390_v57 = vld [vmem:[%s5229_s1 + $0xec] sm:$0xf0]  ;;  %v3405_v42 = vld [vmem:[%s5229_s1 + $0x1dc] sm:$0xf] }
  0x3d   :  { %480 = vmatpush.bf16.msrb.mxu0 %v2251_v55  ;;  %506 = vmatpush.bf16.msrb.mxu2 %v2255_v59  ;;  %v2551_v55 = vor.u32 %v3392_v47, %v2548_v48  ;;  %v2679_v59 = vor.u32 %v3424_v49, %v2676_v51  ;;  %v3422_v60 = vld [vmem:[%s5229_s1 + $0x2ec] sm:$0xf0]  ;;  %v3388_v61 = vld [vmem:[%s5229_s1 + $0xd4] sm:$0xf]  ;;  %v2531_v1 = vor.u32 %v3390_v57, %v2530_v56  ;;  %v2604_v43 = vld [vmem:[%s5229_s1 + $0x1f8] sm:$0xf0] }
  0x3e   :  { %v2532_v62 = vld [vmem:[%s5229_s1 + $0xf0] sm:$0xf0]  ;;  %v2514_v4 = vld [vmem:[%s5229_s1 + $0x90] sm:$0xf]  ;;  %v2732_v47 = vld [vmem:[%s5229_s1 + $0x3f8] sm:$0xf0]  ;;  %v2603_v49 = vor.u32 %v3407_v38, %v2602_v37 }
  0x3f   :  { %493 = vmatpush.bf16.msrb.mxu1 %v2379_v58  ;;  %519 = vmatpush.bf16.msrb.mxu3 %v2383_v63  ;;  %v2658_v58 = vld [vmem:[%s5229_s1 + $0x2d0] sm:$0xf]  ;;  %v3420_v63 = vld [vmem:[%s5229_s1 + $0x2d4] sm:$0xf]  ;;  %v2535_v3 = vor.u32 %v3388_v61, %v2532_v62  ;;  %v2714_v56 = vld [vmem:[%s5229_s1 + $0x398] sm:$0xf]  ;;  %v2735_v57 = vor.u32 %v3437_v46, %v2732_v47 }
  0x40   :  { %v2660_v0 = vld [vmem:[%s5229_s1 + $0x2f0] sm:$0xf0]  ;;  %v2659_v2 = vor.u32 %v3422_v60, %v2658_v58  ;;  %v3386_v5 = vld [vmem:[%s5229_s1 + $0xac] sm:$0xf0]  ;;  %v3435_v58 = vld [vmem:[%s5229_s1 + $0x3b4] sm:$0xf0] }
  0x41   :  { %481 = vmatpush.bf16.msrb.mxu0 %v2235_v6  ;;  %507 = vmatpush.bf16.msrb.mxu2 %v2239_v11  ;;  %v2642_v6 = vld [vmem:[%s5229_s1 + $0x290] sm:$0xf]  ;;  %v2663_v7 = vor.u32 %v3420_v63, %v2660_v0  ;;  %v3384_v9 = vld [vmem:[%s5229_s1 + $0x94] sm:$0xf]  ;;  %v2515_v13 = vor.u32 %v3386_v5, %v2514_v4  ;;  %v2588_v60 = vld [vmem:[%s5229_s1 + $0x1b8] sm:$0xf0]  ;;  %v2715_v0 = vor.u32 %v3435_v58, %v2714_v56 }
  0x42   :  { %v3418_v8 = vld [vmem:[%s5229_s1 + $0x2ac] sm:$0xf0]  ;;  %v3416_v11 = vld [vmem:[%s5229_s1 + $0x294] sm:$0xf]  ;;  %v3433_v61 = vld [vmem:[%s5229_s1 + $0x39c] sm:$0xf] }
  0x43   :  { %494 = vmatpush.bf16.msrb.mxu1 %v2363_v10  ;;  %520 = vmatpush.bf16.msrb.mxu3 %v2367_v14  ;;  %v2516_v10 = vld [vmem:[%s5229_s1 + $0xb0] sm:$0xf0]  ;;  %v2643_v14 = vor.u32 %v3418_v8, %v2642_v6  ;;  %v2626_v18 = vld [vmem:[%s5229_s1 + $0x250] sm:$0xf]  ;;  %v2716_v62 = vld [vmem:[%s5229_s1 + $0x3b8] sm:$0xf0] }
  0x44   :  { %508 = vmatmul.bf16.vlgmr.msrb.gmra.mxu2 %v3783_v50  ;;  %482 = vmatmul.bf16.vlgmr.msrb.gmra.mxu0 %v3783_v50  ;;  %v2644_v12 = vld [vmem:[%s5229_s1 + $0x2b0] sm:$0xf0]  ;;  %v3414_v20 = vld [vmem:[%s5229_s1 + $0x26c] sm:$0xf0]  ;;  %v2698_v4 = vld [vmem:[%s5229_s1 + $0x358] sm:$0xf]  ;;  %v2719_v5 = vor.u32 %v3433_v61, %v2716_v62 }
  0x45   :  { %1078 = vmatpush.bf16.msra.mxu0 %v2595_v15  ;;  %1104 = vmatpush.bf16.msra.mxu2 %v2599_v17  ;;  %v2519_v15 = vor.u32 %v3384_v9, %v2516_v10  ;;  %v3382_v17 = vld [vmem:[%s5229_s1 + $0x6c] sm:$0xf0]  ;;  %v2647_v19 = vor.u32 %v3416_v11, %v2644_v12  ;;  %v2500_v22 = vld [vmem:[%s5229_s1 + $0x70] sm:$0xf0]  ;;  %v3431_v6 = vld [vmem:[%s5229_s1 + $0x374] sm:$0xf0] }
  0x46   :  { %521 = vmatmul.bf16.vlgmr.msrb.gmra.mxu3 %v3794_v54  ;;  %495 = vmatmul.bf16.vlgmr.msrb.gmra.mxu1 %v3794_v54  ;;  %v3412_v23 = vld [vmem:[%s5229_s1 + $0x254] sm:$0xf]  ;;  %v2482_v26 = vld [vmem:[%s5229_s1 + $0x10] sm:$0xf]  ;;  %v2572_v8 = vld [vmem:[%s5229_s1 + $0x178] sm:$0xf0]  ;;  %v2699_v12 = vor.u32 %v3431_v6, %v2698_v4 }
  0x47   :  { %1091 = vmatpush.bf16.msra.mxu1 %v2723_v16  ;;  %1117 = vmatpush.bf16.msra.mxu3 %v2727_v21  ;;  %v2498_v16 = vld [vmem:[%s5229_s1 + $0x50] sm:$0xf]  ;;  %v3380_v21 = vld [vmem:[%s5229_s1 + $0x54] sm:$0xf]  ;;  %v3429_v9 = vld [vmem:[%s5229_s1 + $0x35c] sm:$0xf] }
  0x48   :  { %v2628_v24 = vld [vmem:[%s5229_s1 + $0x270] sm:$0xf0]  ;;  %v2499_v25 = vor.u32 %v3382_v17, %v2498_v16  ;;  %v2610_v30 = vld [vmem:[%s5229_s1 + $0x210] sm:$0xf]  ;;  %v2700_v10 = vld [vmem:[%s5229_s1 + $0x378] sm:$0xf0] }
  0x49   :  { %1079 = vmatpush.bf16.msra.mxu0 %v2579_v27  ;;  %1105 = vmatpush.bf16.msra.mxu2 %v2583_v29  ;;  %v3378_v27 = vld [vmem:[%s5229_s1 + $0x2c] sm:$0xf0]  ;;  %v2503_v29 = vor.u32 %v3380_v21, %v2500_v22  ;;  %v3376_v32 = vld [vmem:[%s5229_s1 + $0x14] sm:$0xf]  ;;  %v2682_v16 = vld [vmem:[%s5229_s1 + $0x318] sm:$0xf]  ;;  %v2703_v17 = vor.u32 %v3429_v9, %v2700_v10 }
  0x4a   :  { %v3410_v31 = vld [vmem:[%s5229_s1 + $0x22c] sm:$0xf0]  ;;  %v2484_v34 = vld [vmem:[%s5229_s1 + $0x30] sm:$0xf0]  ;;  %v3425_v21 = vld [vmem:[%s5229_s1 + $0x31c] sm:$0xf] }
  0x4b   :  { %1092 = vmatpush.bf16.msra.mxu1 %v2707_v28  ;;  %1118 = vmatpush.bf16.msra.mxu3 %v2711_v33  ;;  %v2627_v28 = vor.u32 %v3414_v20, %v2626_v18  ;;  %v2631_v33 = vor.u32 %v3412_v23, %v2628_v24  ;;  %v3408_v35 = vld [vmem:[%s5229_s1 + $0x214] sm:$0xf]  ;;  %v2611_v44 = vor.u32 %v3410_v31, %v2610_v30  ;;  %v3427_v18 = vld [vmem:[%s5229_s1 + $0x334] sm:$0xf0]  ;;  %v2556_v20 = vld [vmem:[%s5229_s1 + $0x138] sm:$0xf0] }
  0x4c   :  { %v2612_v36 = vld [vmem:[%s5229_s1 + $0x230] sm:$0xf0]  ;;  %v2684_v22 = vld [vmem:[%s5229_s1 + $0x338] sm:$0xf0]  ;;  %v2683_v24 = vor.u32 %v3427_v18, %v2682_v16  ;;  %v3423_v30 = vld [vmem:[%s5229_s1 + $0x2f4] sm:$0xf0] }
  0x4d   :  { %1080 = vmatpush.bf16.msra.mxu0 %v2563_v39  ;;  %1106 = vmatpush.bf16.msra.mxu2 %v2567_v41  ;;  %v2730_v39 = vld [vmem:[%s5229_s1 + $0x3d8] sm:$0xf]  ;;  %v2615_v48 = vor.u32 %v3408_v35, %v2612_v36  ;;  %v3389_v31 = vld [vmem:[%s5229_s1 + $0xdc] sm:$0xf] }
  0x4e   :  { %v3439_v41 = vld [vmem:[%s5229_s1 + $0x3f4] sm:$0xf0]  ;;  %v2652_v46 = vld [vmem:[%s5229_s1 + $0x2b8] sm:$0xf0] }
  0x4f   :  { %1093 = vmatpush.bf16.msra.mxu1 %v2691_v40  ;;  %1119 = vmatpush.bf16.msra.mxu3 %v2695_v45  ;;  %v2483_v40 = vor.u32 %v3378_v27, %v2482_v26  ;;  %v2487_v45 = vor.u32 %v3376_v32, %v2484_v34  ;;  %v2731_v51 = vor.u32 %v3439_v41, %v2730_v39  ;;  %v2538_v26 = vld [vmem:[%s5229_s1 + $0xd8] sm:$0xf]  ;;  %v2540_v32 = vld [vmem:[%s5229_s1 + $0xf8] sm:$0xf0] }
  0x50   :  { %v3391_v27 = vld [vmem:[%s5229_s1 + $0xf4] sm:$0xf0]  ;;  %v2668_v34 = vld [vmem:[%s5229_s1 + $0x2f8] sm:$0xf0]  ;;  %v2543_v37 = vor.u32 %v3389_v31, %v2540_v32 }
  0x51   :  { %1081 = vmatpush.bf16.msra.mxu0 %v2547_v52  ;;  %1107 = vmatpush.bf16.msra.mxu2 %v2551_v55  ;;  %v2607_v52 = vor.u32 %v3405_v42, %v2604_v43  ;;  %v3403_v55 = vld [vmem:[%s5229_s1 + $0x1b4] sm:$0xf0]  ;;  %v2539_v35 = vor.u32 %v3391_v27, %v2538_v26  ;;  %v3385_v43 = vld [vmem:[%s5229_s1 + $0x9c] sm:$0xf] }
  0x52   :  { %v2522_v38 = vld [vmem:[%s5229_s1 + $0x98] sm:$0xf]  ;;  %v2508_v58 = vld [vmem:[%s5229_s1 + $0x78] sm:$0xf0] }
  0x53   :  { %1094 = vmatpush.bf16.msra.mxu1 %v2675_v53  ;;  %1120 = vmatpush.bf16.msra.mxu3 %v2679_v59  ;;  %v2586_v53 = vld [vmem:[%s5229_s1 + $0x198] sm:$0xf]  ;;  %v3401_v59 = vld [vmem:[%s5229_s1 + $0x19c] sm:$0xf] }
  0x54   :  { %v2587_v63 = vor.u32 %v3403_v55, %v2586_v53  ;;  %v3387_v39 = vld [vmem:[%s5229_s1 + $0xb4] sm:$0xf0]  ;;  %v2492_v6 = vld [vmem:[%s5229_s1 + $0x38] sm:$0xf0] }
  0x55   :  { %1082 = vmatpush.bf16.msra.mxu0 %v2531_v1  ;;  %1108 = vmatpush.bf16.msra.mxu2 %v2535_v3  ;;  %v2591_v1 = vor.u32 %v3401_v59, %v2588_v60  ;;  %v3399_v3 = vld [vmem:[%s5229_s1 + $0x174] sm:$0xf0]  ;;  %v2523_v47 = vor.u32 %v3387_v39, %v2522_v38  ;;  %v3413_v59 = vld [vmem:[%s5229_s1 + $0x25c] sm:$0xf] }
  0x56   :  { %v3419_v42 = vld [vmem:[%s5229_s1 + $0x2b4] sm:$0xf0]  ;;  %v2636_v60 = vld [vmem:[%s5229_s1 + $0x278] sm:$0xf0] }
  0x57   :  { %1095 = vmatpush.bf16.msra.mxu1 %v2659_v2  ;;  %1121 = vmatpush.bf16.msra.mxu3 %v2663_v7  ;;  %v2570_v2 = vld [vmem:[%s5229_s1 + $0x158] sm:$0xf]  ;;  %v3397_v7 = vld [vmem:[%s5229_s1 + $0x15c] sm:$0xf] }
  0x58   :  { %v2571_v11 = vor.u32 %v3399_v3, %v2570_v2  ;;  %v2634_v53 = vld [vmem:[%s5229_s1 + $0x258] sm:$0xf]  ;;  %v2639_v3 = vor.u32 %v3413_v59, %v2636_v60  ;;  %v3469_v59 = vld [vmem:[%s5232_s3 + $0x2e4] sm:$0xf0] }
  0x59   :  { %1083 = vmatpush.bf16.msra.mxu0 %v2515_v13  ;;  %1109 = vmatpush.bf16.msra.mxu2 %v2519_v15  ;;  %v2575_v13 = vor.u32 %v3397_v7, %v2572_v8  ;;  %v3395_v15 = vld [vmem:[%s5229_s1 + $0x134] sm:$0xf0]  ;;  %v3409_v7 = vld [vmem:[%s5229_s1 + $0x21c] sm:$0xf] }
  0x5a   :  { %v3415_v56 = vld [vmem:[%s5229_s1 + $0x274] sm:$0xf0]  ;;  %v2620_v8 = vld [vmem:[%s5229_s1 + $0x238] sm:$0xf0] }
  0x5b   :  { %1096 = vmatpush.bf16.msra.mxu1 %v2643_v14  ;;  %1122 = vmatpush.bf16.msra.mxu3 %v2647_v19  ;;  %v2554_v14 = vld [vmem:[%s5229_s1 + $0x118] sm:$0xf]  ;;  %v3393_v19 = vld [vmem:[%s5229_s1 + $0x11c] sm:$0xf]  ;;  %v2635_v62 = vor.u32 %v3415_v56, %v2634_v53  ;;  %v2786_v53 = vld [vmem:[%s5232_s3 + $0x260] sm:$0xf] }
  0x5c   :  { %v2555_v23 = vor.u32 %v3395_v15, %v2554_v14  ;;  %v2618_v2 = vld [vmem:[%s5229_s1 + $0x218] sm:$0xf]  ;;  %v2850_v56 = vld [vmem:[%s5232_s3 + $0x2e0] sm:$0xf] }
  0x5d   :  { %1084 = vmatpush.bf16.msra.mxu0 %v2499_v25  ;;  %1110 = vmatpush.bf16.msra.mxu2 %v2503_v29  ;;  %v2559_v25 = vor.u32 %v3393_v19, %v2556_v20  ;;  %v2687_v29 = vor.u32 %v3425_v21, %v2684_v22  ;;  %v3411_v4 = vld [vmem:[%s5229_s1 + $0x234] sm:$0xf0]  ;;  %v2851_v60 = vor.u32 %v3469_v59, %v2850_v56  ;;  %v3457_v56 = vld [vmem:[%s5232_s3 + $0x284] sm:$0xf0] }
  0x5e   :  { %v2619_v10 = vor.u32 %v3411_v4, %v2618_v2 }
  0x5f   :  { %1097 = vmatpush.bf16.msra.mxu1 %v2627_v28  ;;  %1123 = vmatpush.bf16.msra.mxu3 %v2631_v33  ;;  %v2666_v28 = vld [vmem:[%s5229_s1 + $0x2d8] sm:$0xf]  ;;  %v3421_v33 = vld [vmem:[%s5229_s1 + $0x2dc] sm:$0xf] }
  0x60   :  { %v2667_v36 = vor.u32 %v3423_v30, %v2666_v28  ;;  %v2671_v41 = vor.u32 %v3421_v33, %v2668_v34 }
  0x61   :  { %1085 = vmatpush.bf16.msra.mxu0 %v2483_v40  ;;  %1111 = vmatpush.bf16.msra.mxu2 %v2487_v45  ;;  %v2650_v40 = vld [vmem:[%s5229_s1 + $0x298] sm:$0xf]  ;;  %v3417_v45 = vld [vmem:[%s5229_s1 + $0x29c] sm:$0xf] }
  0x62   :  { %v2655_v55 = vor.u32 %v3417_v45, %v2652_v46 }
  0x63   :  { %1098 = vmatpush.bf16.msra.mxu1 %v2611_v44  ;;  %1124 = vmatpush.bf16.msra.mxu3 %v2615_v48  ;;  %v2524_v44 = vld [vmem:[%s5229_s1 + $0xb8] sm:$0xf0]  ;;  %v2651_v48 = vor.u32 %v3419_v42, %v2650_v40  ;;  %v2794_v42 = vld [vmem:[%s5232_s3 + $0x270] sm:$0xf] }
  0x64   :  { %1112 = vmatmul.bf16.vlgmr.msra.gmra.mxu2 %v3783_v50  ;;  %1086 = vmatmul.bf16.vlgmr.msra.gmra.mxu0 %v3783_v50 }
  0x65   :  { %1130 = vmatpush.bf16.msrb.mxu0 %v2603_v49  ;;  %1156 = vmatpush.bf16.msrb.mxu2 %v2607_v52  ;;  %v2527_v49 = vor.u32 %v3385_v43, %v2524_v44  ;;  %v3383_v52 = vld [vmem:[%s5229_s1 + $0x74] sm:$0xf0]  ;;  %v2858_v44 = vld [vmem:[%s5232_s3 + $0x2f0] sm:$0xf] }
  0x66   :  { %1125 = vmatmul.bf16.vlgmr.msra.gmra.mxu3 %v3794_v54  ;;  %1099 = vmatmul.bf16.vlgmr.msra.gmra.mxu1 %v3794_v54  ;;  %v3455_v43 = vld [vmem:[%s5232_s3 + $0x274] sm:$0xf0] }
  0x67   :  { %1143 = vmatpush.bf16.msrb.mxu1 %v2731_v51  ;;  %1169 = vmatpush.bf16.msrb.mxu3 %v2735_v57  ;;  %v2506_v51 = vld [vmem:[%s5229_s1 + $0x58] sm:$0xf]  ;;  %v3381_v57 = vld [vmem:[%s5229_s1 + $0x5c] sm:$0xf] }
  0x68   :  { %v2507_v61 = vor.u32 %v3383_v52, %v2506_v51 }
  0x69   :  { %1131 = vmatpush.bf16.msrb.mxu0 %v2587_v63  ;;  %1157 = vmatpush.bf16.msrb.mxu2 %v2591_v1  ;;  %v2511_v63 = vor.u32 %v3381_v57, %v2508_v58  ;;  %v3379_v1 = vld [vmem:[%s5229_s1 + $0x34] sm:$0xf0] }
  0x6b   :  { %1144 = vmatpush.bf16.msrb.mxu1 %v2715_v0  ;;  %1170 = vmatpush.bf16.msrb.mxu3 %v2719_v5  ;;  %v2490_v0 = vld [vmem:[%s5229_s1 + $0x18] sm:$0xf]  ;;  %v3377_v5 = vld [vmem:[%s5229_s1 + $0x1c] sm:$0xf] }
  0x6c   :  { %v2491_v9 = vor.u32 %v3379_v1, %v2490_v0 }
  0x6d   :  { %1132 = vmatpush.bf16.msrb.mxu0 %v2571_v11  ;;  %1158 = vmatpush.bf16.msrb.mxu2 %v2575_v13  ;;  %v2495_v11 = vor.u32 %v3377_v5, %v2492_v6  ;;  %v85_v13 = vld [vmem:[%s5231_s2] sm:$0xf]  ;;  %v3449_v6 = vld [vmem:[%s5232_s3 + $0x244] sm:$0xf0] }
  0x6e   :  { %v87_v14 = vperm.slane %v85_v13, 0  ;;  %v88_v18 = vperm.slane %v85_v13, 1  ;;  %v90_v31 = vperm.slane %v85_v13, 3  ;;  %v2770_v5 = vld [vmem:[%s5232_s3 + $0x240] sm:$0xf] }
  0x6f   :  { %1145 = vmatpush.bf16.msrb.mxu1 %v2699_v12  ;;  %1171 = vmatpush.bf16.msrb.mxu3 %v2703_v17  ;;  %v2623_v12 = vor.u32 %v3409_v7, %v2620_v8  ;;  %v2834_v7 = vld [vmem:[%s5232_s3 + $0x2c0] sm:$0xf] }
  0x71   :  { %1133 = vmatpush.bf16.msrb.mxu0 %v2555_v23  ;;  %1159 = vmatpush.bf16.msrb.mxu2 %v2559_v25 }
  0x73   :  { %1146 = vmatpush.bf16.msrb.mxu1 %v2683_v24  ;;  %1172 = vmatpush.bf16.msrb.mxu3 %v2687_v29 }
  0x75   :  { %1134 = vmatpush.bf16.msrb.mxu0 %v2539_v35  ;;  %1160 = vmatpush.bf16.msrb.mxu2 %v2543_v37 }
  0x77   :  { %1147 = vmatpush.bf16.msrb.mxu1 %v2667_v36  ;;  %1173 = vmatpush.bf16.msrb.mxu3 %v2671_v41 }
  0x79   :  { %1135 = vmatpush.bf16.msrb.mxu0 %v2523_v47  ;;  %1161 = vmatpush.bf16.msrb.mxu2 %v2527_v49  ;;  %v2795_v47 = vor.u32 %v3455_v43, %v2794_v42 }
  0x7b   :  { %1148 = vmatpush.bf16.msrb.mxu1 %v2651_v48  ;;  %1174 = vmatpush.bf16.msrb.mxu3 %v2655_v55  ;;  %v3471_v48 = vld [vmem:[%s5232_s3 + $0x2f4] sm:$0xf0]  ;;  %v3453_v55 = vld [vmem:[%s5232_s3 + $0x264] sm:$0xf0] }
  0x7c   :  { %v2859_v51 = vor.u32 %v3471_v48, %v2858_v44  ;;  %v2787_v58 = vor.u32 %v3453_v55, %v2786_v53  ;;  %v2802_v55 = vld [vmem:[%s5232_s3 + $0x280] sm:$0xf] }
  0x7d   :  { %1136 = vmatpush.bf16.msrb.mxu0 %v2507_v61  ;;  %1162 = vmatpush.bf16.msrb.mxu2 %v2511_v63  ;;  %v2778_v61 = vld [vmem:[%s5232_s3 + $0x250] sm:$0xf] }
  0x7e   :  { %v2842_v63 = vld [vmem:[%s5232_s3 + $0x2d0] sm:$0xf] }
  0x7f   :  { %1149 = vmatpush.bf16.msrb.mxu1 %v2635_v62  ;;  %1175 = vmatpush.bf16.msrb.mxu3 %v2639_v3  ;;  %v3451_v62 = vld [vmem:[%s5232_s3 + $0x254] sm:$0xf0] }
  0x80   :  { %v2779_v2 = vor.u32 %v3451_v62, %v2778_v61  ;;  %v3467_v3 = vld [vmem:[%s5232_s3 + $0x2d4] sm:$0xf0]  ;;  %v2986_v62 = vld [vmem:[%s5232_s3 + $0x3f0] sm:$0xf] }
  0x81   :  { %1137 = vmatpush.bf16.msrb.mxu0 %v2491_v9  ;;  %1163 = vmatpush.bf16.msrb.mxu2 %v2495_v11  ;;  %v2843_v4 = vor.u32 %v3467_v3, %v2842_v63  ;;  %v3465_v11 = vld [vmem:[%s5232_s3 + $0x2c4] sm:$0xf0]  ;;  %v3487_v61 = vld [vmem:[%s5232_s3 + $0x374] sm:$0xf0]  ;;  %v2796_v3 = vld [vmem:[%s5232_s3 + $0x278] sm:$0xf0] }
  0x82   :  { %v3503_v63 = vld [vmem:[%s5232_s3 + $0x3f4] sm:$0xf0] }
  0x83   :  { %1150 = vmatpush.bf16.msrb.mxu1 %v2619_v10  ;;  %1176 = vmatpush.bf16.msrb.mxu3 %v2623_v12  ;;  %v2771_v10 = vor.u32 %v3449_v6, %v2770_v5  ;;  %v2835_v12 = vor.u32 %v3465_v11, %v2834_v7  ;;  %v2860_v7 = vld [vmem:[%s5232_s3 + $0x2f8] sm:$0xf0]  ;;  %v2914_v11 = vld [vmem:[%s5232_s3 + $0x360] sm:$0xf] }
  0x84   :  { %1138 = vmatmul.bf16.vlgmr.msrb.gmra.mxu0 %v3783_v50  ;;  %1164 = vmatmul.bf16.vlgmr.msrb.gmra.mxu2 %v3783_v50 }
  0x85   :  { %1660 = vmatpush.bf16.msra.mxu0 %v2795_v47 }
  0x86   :  { %1151 = vmatmul.bf16.vlgmr.msrb.gmra.mxu1 %v3794_v54  ;;  %1177 = vmatmul.bf16.vlgmr.msrb.gmra.mxu3 %v3794_v54  ;;  %v89_v54 = vperm.slane %v85_v13, 2  ;;  %v4412_v13 = vld [vmem:[%s5231_s2 + $0x4] sm:$0xf] }
  0x87   :  { %1673 = vmatpush.bf16.msra.mxu1 %v2859_v51  ;;  %v3441_v51 = vld [vmem:[%s5232_s3 + $0x204] sm:$0xf0] }
  0x89   :  { %1661 = vmatpush.bf16.msra.mxu0 %v2787_v58 }
  0x8b   :  { %1674 = vmatpush.bf16.msra.mxu1 %v2851_v60  ;;  %v2803_v60 = vor.u32 %v3457_v56, %v2802_v55  ;;  %v3481_v55 = vld [vmem:[%s5232_s3 + $0x344] sm:$0xf0]  ;;  %v2962_v56 = vld [vmem:[%s5232_s3 + $0x3c0] sm:$0xf] }
  0x8d   :  { %1662 = vmatpush.bf16.msra.mxu0 %v2779_v2  ;;  %v3454_v2 = vld [vmem:[%s5232_s3 + $0x274] sm:$0xf] }
  0x8f   :  { %1675 = vmatpush.bf16.msra.mxu1 %v2843_v4  ;;  %v3470_v4 = vld [vmem:[%s5232_s3 + $0x2f4] sm:$0xf] }
  0x91   :  { %1663 = vmatpush.bf16.msra.mxu0 %v2771_v10  ;;  %v2863_v10 = vor.u32 %v3470_v4, %v2860_v7  ;;  %v752_v7 = vperm.slane %v4412_v13, 2 }
  0x93   :  { %1676 = vmatpush.bf16.msra.mxu1 %v2835_v12  ;;  %v3485_v12 = vld [vmem:[%s5232_s3 + $0x364] sm:$0xf0] }
  0xa5   :  { %v431_v15 = vpop.f32.mrf.mxu0  ;;  %v444_v17 = vpop.f32.mrf.mxu1 }
  0xa6   :  { %v432_v16 = vadd.f32 %v431_v15, %v87_v14  ;;  %v2762_v14 = vld [vmem:[%s5232_s3 + $0x230] sm:$0xf]  ;;  %v3447_v15 = vld [vmem:[%s5232_s3 + $0x234] sm:$0xf0] }
  0xa8   :  { %v445_v19 = vadd.f32 %v444_v17, %v432_v16  ;;  %v2763_v17 = vor.u32 %v3447_v15, %v2762_v14  ;;  %v2978_v14 = vld [vmem:[%s5232_s3 + $0x3e0] sm:$0xf] }
  0xa9   :  { %v457_v20 = vpop.f32.mrf.mxu2  ;;  %v470_v22 = vpop.f32.mrf.mxu3 }
  0xaa   :  { %v458_v21 = vadd.f32 %v457_v20, %v88_v18  ;;  %v2826_v18 = vld [vmem:[%s5232_s3 + $0x2b0] sm:$0xf]  ;;  %v750_v20 = vperm.slane %v4412_v13, 0  ;;  %1664 = vmatpush.bf16.msra.mxu0 %v2763_v17 }
  0xac   :  { %v471_v23 = vadd.f32 %v470_v22, %v458_v21 }
  0xad   :  { %v433_v24 = vpop.f32.mrf.mxu0  ;;  %v446_v25 = vpop.f32.mrf.mxu1 }
  0xae   :  { %v526_v26 = vpack.c.bf16 %v471_v23, %v445_v19  ;;  %v3463_v19 = vld [vmem:[%s5232_s3 + $0x2b4] sm:$0xf0]  ;;  %v2754_v23 = vld [vmem:[%s5232_s3 + $0x220] sm:$0xf]  ;;  %v3445_v24 = vld [vmem:[%s5232_s3 + $0x224] sm:$0xf0] }
  0xaf   :  { %v2827_v21 = vor.u32 %v3463_v19, %v2826_v18  ;;  %v2818_v25 = vld [vmem:[%s5232_s3 + $0x2a0] sm:$0xf]  ;;  %v2915_v19 = vor.u32 %v3485_v12, %v2914_v11  ;;  %v3479_v11 = vld [vmem:[%s5232_s3 + $0x334] sm:$0xf0]  ;;  %v2954_v12 = vld [vmem:[%s5232_s3 + $0x3b0] sm:$0xf] }
  0xb0   :  { %v4349_v36 = vunpack.c.l.bf16 %v526_v26  ;;  %v4351_v37 = vunpack.c.h.bf16 %v526_v26 }
  0xb1   :  { %v459_v50 = vpop.f32.mrf.mxu2  ;;  %v472_v27 = vpop.f32.mrf.mxu3  ;;  %1677 = vmatpush.bf16.msra.mxu1 %v2827_v21  ;;  %v3452_v21 = vld [vmem:[%s5232_s3 + $0x264] sm:$0xf] }
  0xb2   :  { %v532_v45 = vmul.f32 %v4349_v36, %v4349_v36  ;;  %v533_v46 = vmul.f32 %v4351_v37, %v4351_v37  ;;  %v2755_v27 = vor.u32 %v3445_v24, %v2754_v23 }
  0xb4   :  { %v536_v57 = vpack.c.bf16 %v533_v46, %v532_v45  ;;  %1665 = vmatpush.bf16.msra.mxu0 %v2755_v27 }
  0xb6   :  { %v538_v0 = vunpack.c.l.bf16 %v536_v57  ;;  %v539_v1 = vunpack.c.h.bf16 %v536_v57  ;;  %v2922_v57 = vld [vmem:[%s5232_s3 + $0x370] sm:$0xf] }
  0xb8   :  { %v542_v8 = vmul.f32 %v538_v0, %v4349_v36  ;;  %v543_v9 = vmul.f32 %v539_v1, %v4351_v37  ;;  %v2923_v0 = vor.u32 %v3487_v61, %v2922_v57  ;;  %v2987_v1 = vor.u32 %v3503_v63, %v2986_v62  ;;  %v2772_v61 = vld [vmem:[%s5232_s3 + $0x248] sm:$0xf0] }
  0xba   :  { %v546_v16 = vpack.c.bf16 %v543_v9, %v542_v8  ;;  %1686 = vmatpush.bf16.msra.mxu2 %v2923_v0  ;;  %v2799_v9 = vor.u32 %v3454_v2, %v2796_v3  ;;  %1699 = vmatpush.bf16.msra.mxu3 %v2987_v1  ;;  %v3464_v1 = vld [vmem:[%s5232_s3 + $0x2c4] sm:$0xf]  ;;  %v2836_v2 = vld [vmem:[%s5232_s3 + $0x2c8] sm:$0xf0] }
  0xbc   :  { %v548_v26 = vunpack.c.l.bf16 %v546_v16 }
  0xbe   :  { %1687 = vmatpush.bf16.msra.mxu2 %v2915_v19 }
  0xc1   :  { %v483_v28 = vpop.f32.mrf.mxu0 }
  0xc2   :  { %v484_v29 = vadd.f32 %v483_v28, %v89_v54  ;;  %v3461_v54 = vld [vmem:[%s5232_s3 + $0x2a4] sm:$0xf0]  ;;  %v549_v28 = vunpack.c.h.bf16 %v546_v16 }
  0xc3   :  { %v496_v30 = vpop.f32.mrf.mxu1 }
  0xc4   :  { %v497_v32 = vadd.f32 %v496_v30, %v484_v29  ;;  %v751_v30 = vperm.slane %v4412_v13, 1  ;;  %v553_v42 = vmul.f32 0.044677734, %v549_v28 }
  0xc7   :  { %v509_v33 = vpop.f32.mrf.mxu2 }
  0xc8   :  { %v510_v34 = vadd.f32 %v509_v33, %v90_v31  ;;  %v2819_v31 = vor.u32 %v3461_v54, %v2818_v25  ;;  %v3443_v33 = vld [vmem:[%s5232_s3 + $0x214] sm:$0xf0] }
  0xc9   :  { %v522_v35 = vpop.f32.mrf.mxu3  ;;  %v485_v39 = vpop.f32.mrf.mxu0 }
  0xca   :  { %v523_v38 = vadd.f32 %v522_v35, %v510_v34  ;;  %v2810_v34 = vld [vmem:[%s5232_s3 + $0x290] sm:$0xf]  ;;  %v552_v35 = vmul.f32 0.044677734, %v548_v26  ;;  %1678 = vmatpush.bf16.msra.mxu1 %v2819_v31  ;;  %v3468_v26 = vld [vmem:[%s5232_s3 + $0x2e4] sm:$0xf] }
  0xcb   :  { %v498_v40 = vpop.f32.mrf.mxu1  ;;  %v3483_v31 = vld [vmem:[%s5232_s3 + $0x354] sm:$0xf0] }
  0xcc   :  { %v4353_v41 = vpack.c.bf16 %v523_v38, %v497_v32  ;;  %v2746_v32 = vld [vmem:[%s5232_s3 + $0x210] sm:$0xf]  ;;  %v3459_v40 = vld [vmem:[%s5232_s3 + $0x294] sm:$0xf0]  ;;  %v556_v58 = vpack.c.bf16 %v553_v42, %v552_v35 }
  0xcd   :  { %v2747_v39 = vor.u32 %v3443_v33, %v2746_v32  ;;  %v2811_v46 = vor.u32 %v3459_v40, %v2810_v34  ;;  %v2970_v32 = vld [vmem:[%s5232_s3 + $0x3d0] sm:$0xf]  ;;  %v2780_v40 = vld [vmem:[%s5232_s3 + $0x258] sm:$0xf0] }
  0xce   :  { %v558_v15 = vunpack.c.l.bf16 %v556_v58  ;;  %v559_v23 = vunpack.c.h.bf16 %v556_v58  ;;  %v4521_v28 = vunpack.c.l.bf16 %v4353_v41 }
  0xcf   :  { %v511_v49 = vpop.f32.mrf.mxu2  ;;  %1666 = vmatpush.bf16.msra.mxu0 %v2747_v39  ;;  %1679 = vmatpush.bf16.msra.mxu1 %v2811_v46  ;;  %v3450_v39 = vld [vmem:[%s5232_s3 + $0x254] sm:$0xf]  ;;  %v2844_v46 = vld [vmem:[%s5232_s3 + $0x2d8] sm:$0xf0] }
  0xd0   :  { %v2738_v49 = vld [vmem:[%s5232_s3 + $0x200] sm:$0xf]  ;;  %v562_v33 = vadd.f32 %v558_v15, %v4349_v36  ;;  %v563_v42 = vadd.f32 %v559_v23, %v4351_v37  ;;  %v2828_v23 = vld [vmem:[%s5232_s3 + $0x2b8] sm:$0xf0] }
  0xd1   :  { %v524_v52 = vpop.f32.mrf.mxu3  ;;  %v2739_v53 = vor.u32 %v3441_v51, %v2738_v49  ;;  %v534_v51 = vmul.f32 %v4521_v28, %v4521_v28 }
  0xd2   :  { %v4576_v62 = vpack.c.bf16 %v563_v42, %v562_v33  ;;  %v2946_v33 = vld [vmem:[%s5232_s3 + $0x3a0] sm:$0xf]  ;;  %v2756_v42 = vld [vmem:[%s5232_s3 + $0x228] sm:$0xf0] }
  0xd3   :  { %1667 = vmatpush.bf16.msra.mxu0 %v2739_v53  ;;  %1680 = vmatpush.bf16.msra.mxu1 %v2803_v60  ;;  %v2898_v53 = vld [vmem:[%s5232_s3 + $0x340] sm:$0xf]  ;;  %v3448_v60 = vld [vmem:[%s5232_s3 + $0x244] sm:$0xf] }
  0xd4   :  { %v2899_v58 = vor.u32 %v3481_v55, %v2898_v53  ;;  %v2775_v0 = vor.u32 %v3448_v60, %v2772_v61  ;;  %v568_v19 = vunpack.c.l.bf16 %v4576_v62  ;;  %v2874_v55 = vld [vmem:[%s5232_s3 + $0x310] sm:$0xf]  ;;  %v3491_v61 = vld [vmem:[%s5232_s3 + $0x394] sm:$0xf0] }
  0xd7   :  { %1712 = vmatpush.bf16.msrb.mxu0 %v2799_v9  ;;  %1725 = vmatpush.bf16.msrb.mxu1 %v2863_v10  ;;  %v2890_v10 = vld [vmem:[%s5232_s3 + $0x330] sm:$0xf] }
  0xe1   :  { %v1087_v22 = vpop.f32.mrf.mxu0 }
  0xe2   :  { %v1088_v29 = vadd.f32 %v1087_v22, %v750_v20  ;;  %v3501_v20 = vld [vmem:[%s5232_s3 + $0x3e4] sm:$0xf0]  ;;  %v2788_v22 = vld [vmem:[%s5232_s3 + $0x268] sm:$0xf0] }
  0xe3   :  { %v1100_v50 = vpop.f32.mrf.mxu1  ;;  %v2979_v24 = vor.u32 %v3501_v20, %v2978_v14  ;;  %v2791_v25 = vor.u32 %v3452_v21, %v2788_v22  ;;  %v2764_v21 = vld [vmem:[%s5232_s3 + $0x238] sm:$0xf0]  ;;  %v3462_v22 = vld [vmem:[%s5232_s3 + $0x2b4] sm:$0xf] }
  0xe4   :  { %v1101_v44 = vadd.f32 %v1100_v50, %v1088_v29  ;;  %v2852_v50 = vld [vmem:[%s5232_s3 + $0x2e8] sm:$0xf0]  ;;  %v4524_v29 = vunpack.c.h.bf16 %v4353_v41 }
  0xe5   :  { %v2855_v54 = vor.u32 %v3468_v26, %v2852_v50  ;;  %1700 = vmatpush.bf16.msra.mxu3 %v2979_v24  ;;  %1713 = vmatpush.bf16.msrb.mxu0 %v2791_v25  ;;  %v2831_v50 = vor.u32 %v3462_v22, %v2828_v23 }
  0xe7   :  { %v1113_v38 = vpop.f32.mrf.mxu2  ;;  %1726 = vmatpush.bf16.msrb.mxu1 %v2855_v54 }
  0xe8   :  { %v1114_v43 = vadd.f32 %v1113_v38, %v751_v30  ;;  %v2906_v30 = vld [vmem:[%s5232_s3 + $0x350] sm:$0xf]  ;;  %v3499_v38 = vld [vmem:[%s5232_s3 + $0x3d4] sm:$0xf0] }
  0xe9   :  { %v1126_v45 = vpop.f32.mrf.mxu3  ;;  %v1089_v48 = vpop.f32.mrf.mxu0  ;;  %v2907_v41 = vor.u32 %v3483_v31, %v2906_v30  ;;  %v2882_v31 = vld [vmem:[%s5232_s3 + $0x320] sm:$0xf] }
  0xea   :  { %v1127_v47 = vadd.f32 %v1126_v45, %v1114_v43  ;;  %v2971_v43 = vor.u32 %v3499_v38, %v2970_v32  ;;  %v3466_v45 = vld [vmem:[%s5232_s3 + $0x2d4] sm:$0xf]  ;;  %v3477_v32 = vld [vmem:[%s5232_s3 + $0x324] sm:$0xf0] }
  0xeb   :  { %v1102_v52 = vpop.f32.mrf.mxu1  ;;  %v2847_v49 = vor.u32 %v3466_v45, %v2844_v46  ;;  %1688 = vmatpush.bf16.msra.mxu2 %v2907_v41  ;;  %v2883_v38 = vor.u32 %v3477_v32, %v2882_v31 }
  0xec   :  { %v1182_v59 = vpack.c.bf16 %v1127_v47, %v1101_v44  ;;  %v2783_v44 = vor.u32 %v3450_v39, %v2780_v40  ;;  %v535_v52 = vmul.f32 %v4524_v29, %v4524_v29  ;;  %1701 = vmatpush.bf16.msra.mxu3 %v2971_v43  ;;  %v3493_v39 = vld [vmem:[%s5232_s3 + $0x3a4] sm:$0xf0]  ;;  %v3444_v40 = vld [vmem:[%s5232_s3 + $0x224] sm:$0xf]  ;;  %v4629_v43 = vmul.f32 0.796875, %v568_v19 }
  0xed   :  { %1727 = vmatpush.bf16.msrb.mxu1 %v2847_v49  ;;  %v2947_v45 = vor.u32 %v3493_v39, %v2946_v33  ;;  %v2759_v46 = vor.u32 %v3444_v40, %v2756_v42  ;;  %v2930_v19 = vld [vmem:[%s5232_s3 + $0x380] sm:$0xf]  ;;  %v2988_v40 = vld [vmem:[%s5232_s3 + $0x3f8] sm:$0xf0] }
  0xee   :  { %v4485_v5 = vunpack.c.l.bf16 %v1182_v59  ;;  %v4487_v6 = vunpack.c.h.bf16 %v1182_v59  ;;  %v3497_v59 = vld [vmem:[%s5232_s3 + $0x3c4] sm:$0xf0]  ;;  %1714 = vmatpush.bf16.msrb.mxu0 %v2783_v44  ;;  %v537_v9 = vpack.c.bf16 %v535_v52, %v534_v51  ;;  %v753_v52 = vperm.slane %v4412_v13, 3 }
  0xef   :  { %v1115_v8 = vpop.f32.mrf.mxu2  ;;  %v2963_v63 = vor.u32 %v3497_v59, %v2962_v56  ;;  %1689 = vmatpush.bf16.msra.mxu2 %v2899_v58  ;;  %v3475_v56 = vld [vmem:[%s5232_s3 + $0x314] sm:$0xf0] }
  0xf0   :  { %v1188_v16 = vmul.f32 %v4485_v5, %v4485_v5  ;;  %v1189_v17 = vmul.f32 %v4487_v6, %v4487_v6  ;;  %v2839_v8 = vor.u32 %v3464_v1, %v2836_v2  ;;  %v540_v54 = vunpack.c.l.bf16 %v537_v9 }
  0xf1   :  { %v1128_v18 = vpop.f32.mrf.mxu3  ;;  %1702 = vmatpush.bf16.msra.mxu3 %v2963_v63  ;;  %v2875_v13 = vor.u32 %v3475_v56, %v2874_v55  ;;  %v2748_v63 = vld [vmem:[%s5232_s3 + $0x218] sm:$0xf0]  ;;  %v2916_v55 = vld [vmem:[%s5232_s3 + $0x368] sm:$0xf0]  ;;  %v3500_v56 = vld [vmem:[%s5232_s3 + $0x3e4] sm:$0xf] }
  0xf2   :  { %v1192_v27 = vpack.c.bf16 %v1189_v17, %v1188_v16  ;;  %v2891_v16 = vor.u32 %v3479_v11, %v2890_v10  ;;  %v3495_v17 = vld [vmem:[%s5232_s3 + $0x3b4] sm:$0xf0]  ;;  %v3446_v18 = vld [vmem:[%s5232_s3 + $0x234] sm:$0xf]  ;;  %1715 = vmatpush.bf16.msrb.mxu0 %v2775_v0  ;;  %1728 = vmatpush.bf16.msrb.mxu1 %v2839_v8  ;;  %v544_v58 = vmul.f32 %v540_v54, %v4521_v28  ;;  %v2812_v8 = vld [vmem:[%s5232_s3 + $0x298] sm:$0xf0] }
  0xf3   :  { %v2955_v20 = vor.u32 %v3495_v17, %v2954_v12  ;;  %v2767_v26 = vor.u32 %v3446_v18, %v2764_v21  ;;  %v2866_v17 = vld [vmem:[%s5232_s3 + $0x300] sm:$0xf]  ;;  %v3473_v18 = vld [vmem:[%s5232_s3 + $0x304] sm:$0xf0]  ;;  %v3456_v54 = vld [vmem:[%s5232_s3 + $0x284] sm:$0xf] }
  0xf4   :  { %v1194_v34 = vunpack.c.l.bf16 %v1192_v27  ;;  %v1195_v35 = vunpack.c.h.bf16 %v1192_v27  ;;  %v569_v27 = vunpack.c.h.bf16 %v4576_v62  ;;  %1690 = vmatpush.bf16.msra.mxu2 %v2891_v16  ;;  %v3442_v62 = vld [vmem:[%s5232_s3 + $0x214] sm:$0xf]  ;;  %v2867_v23 = vor.u32 %v3473_v18, %v2866_v17  ;;  %v3496_v18 = vld [vmem:[%s5232_s3 + $0x3c4] sm:$0xf] }
  0xf5   :  { %1703 = vmatpush.bf16.msra.mxu3 %v2955_v20 }
  0xf6   :  { %v1198_v47 = vmul.f32 %v1194_v34, %v4485_v5  ;;  %v1199_v48 = vmul.f32 %v1195_v35, %v4487_v6  ;;  %v541_v34 = vunpack.c.h.bf16 %v537_v9  ;;  %1716 = vmatpush.bf16.msrb.mxu0 %v2767_v26  ;;  %1729 = vmatpush.bf16.msrb.mxu1 %v2831_v50  ;;  %v573_v0 = vmul.f32 0.796875, %v569_v27  ;;  %v2740_v27 = vld [vmem:[%s5232_s3 + $0x208] sm:$0xf0] }
  0xf8   :  { %v1202_v57 = vpack.c.bf16 %v1199_v48, %v1198_v47  ;;  %v3460_v47 = vld [vmem:[%s5232_s3 + $0x2a4] sm:$0xf]  ;;  %v2820_v48 = vld [vmem:[%s5232_s3 + $0x2a8] sm:$0xf0]  ;;  %1691 = vmatpush.bf16.msra.mxu2 %v2883_v38  ;;  %v545_v59 = vmul.f32 %v541_v34, %v4524_v29  ;;  %v3502_v38 = vld [vmem:[%s5232_s3 + $0x3f4] sm:$0xf] }
  0xf9   :  { %v2823_v53 = vor.u32 %v3460_v47, %v2820_v48  ;;  %1704 = vmatpush.bf16.msra.mxu3 %v2947_v45  ;;  %v3484_v47 = vld [vmem:[%s5232_s3 + $0x364] sm:$0xf]  ;;  %v576_v48 = vpack.c.bf16 %v573_v0, %v4629_v43  ;;  %v3498_v0 = vld [vmem:[%s5232_s3 + $0x3d4] sm:$0xf] }
  0xfa   :  { %v1204_v3 = vunpack.c.l.bf16 %v1202_v57  ;;  %v1205_v4 = vunpack.c.h.bf16 %v1202_v57  ;;  %v2938_v57 = vld [vmem:[%s5232_s3 + $0x390] sm:$0xf]  ;;  %1717 = vmatpush.bf16.msrb.mxu0 %v2759_v46  ;;  %v547_v26 = vpack.c.bf16 %v545_v59, %v544_v58 }
  0xfb   :  { %1730 = vmatpush.bf16.msrb.mxu1 %v2823_v53  ;;  %v2991_v53 = vor.u32 %v3502_v38, %v2988_v40 }
  0xfc   :  { %v1208_v14 = vmul.f32 0.044677734, %v1204_v3  ;;  %v1209_v15 = vmul.f32 0.044677734, %v1205_v4  ;;  %v2939_v3 = vor.u32 %v3491_v61, %v2938_v57  ;;  %v2751_v4 = vor.u32 %v3442_v62, %v2748_v63  ;;  %1692 = vmatpush.bf16.msra.mxu2 %v2875_v13  ;;  %v2980_v57 = vld [vmem:[%s5232_s3 + $0x3e8] sm:$0xf0]  ;;  %v3482_v61 = vld [vmem:[%s5232_s3 + $0x354] sm:$0xf] }
  0xfd   :  { %v2983_v13 = vor.u32 %v3500_v56, %v2980_v57  ;;  %v2908_v62 = vld [vmem:[%s5232_s3 + $0x358] sm:$0xf0] }
  0xfe   :  { %v1212_v24 = vpack.c.bf16 %v1209_v15, %v1208_v14  ;;  %1705 = vmatpush.bf16.msra.mxu3 %v2939_v3  ;;  %1718 = vmatpush.bf16.msrb.mxu0 %v2751_v4  ;;  %v578_v4 = vunpack.c.l.bf16 %v576_v48 }
 0x100   :  { %v1214_v35 = vunpack.c.l.bf16 %v1212_v24  ;;  %v1215_v41 = vunpack.c.h.bf16 %v1212_v24  ;;  %v3489_v24 = vld [vmem:[%s5232_s3 + $0x384] sm:$0xf0]  ;;  %1693 = vmatpush.bf16.msra.mxu2 %v2867_v23 }
 0x101   :  { %v1139_v25 = vpop.f32.mrf.mxu0  ;;  %v2931_v50 = vor.u32 %v3489_v24, %v2930_v19  ;;  %v2964_v19 = vld [vmem:[%s5232_s3 + $0x3c8] sm:$0xf0] }
 0x102   :  { %v1140_v44 = vadd.f32 %v1139_v25, %v752_v7  ;;  %v1218_v49 = vadd.f32 %v1214_v35, %v4485_v5  ;;  %v1219_v51 = vadd.f32 %v1215_v41, %v4487_v6  ;;  %v3458_v7 = vld [vmem:[%s5232_s3 + $0x294] sm:$0xf]  ;;  %v3440_v25 = vld [vmem:[%s5232_s3 + $0x204] sm:$0xf]  ;;  %v2924_v41 = vld [vmem:[%s5232_s3 + $0x378] sm:$0xf0] }
 0x103   :  { %v1152_v30 = vpop.f32.mrf.mxu1  ;;  %v2815_v15 = vor.u32 %v3458_v7, %v2812_v8  ;;  %v2743_v33 = vor.u32 %v3440_v25, %v2740_v27  ;;  %v3486_v35 = vld [vmem:[%s5232_s3 + $0x374] sm:$0xf]  ;;  %1706 = vmatpush.bf16.msra.mxu3 %v2931_v50  ;;  %v2967_v25 = vor.u32 %v3496_v18, %v2964_v19 }
 0x104   :  { %v1222_v60 = vpack.c.bf16 %v1219_v51, %v1218_v49  ;;  %v1153_v1 = vadd.f32 %v1152_v30, %v1140_v44  ;;  %v2804_v30 = vld [vmem:[%s5232_s3 + $0x288] sm:$0xf0]  ;;  %v2927_v39 = vor.u32 %v3486_v35, %v2924_v41  ;;  %v550_v49 = vunpack.c.l.bf16 %v547_v26  ;;  %v2956_v41 = vld [vmem:[%s5232_s3 + $0x3b8] sm:$0xf0] }
 0x105   :  { %1731 = vmatpush.bf16.msrb.mxu1 %v2815_v15  ;;  %v2807_v34 = vor.u32 %v3456_v54, %v2804_v30  ;;  %v551_v51 = vunpack.c.h.bf16 %v547_v26  ;;  %1719 = vmatpush.bf16.msrb.mxu0 %v2743_v33  ;;  %v3478_v30 = vld [vmem:[%s5232_s3 + $0x334] sm:$0xf] }
 0x106   :  { %v1224_v9 = vunpack.c.l.bf16 %v1222_v60  ;;  %v1225_v10 = vunpack.c.h.bf16 %v1222_v60  ;;  %1738 = vmatpush.bf16.msrb.mxu2 %v2927_v39  ;;  %v2919_v60 = vor.u32 %v3484_v47, %v2916_v55  ;;  %v3476_v47 = vld [vmem:[%s5232_s3 + $0x324] sm:$0xf]  ;;  %v2948_v55 = vld [vmem:[%s5232_s3 + $0x3a8] sm:$0xf0] }
 0x107   :  { %v1165_v2 = vpop.f32.mrf.mxu2  ;;  %1751 = vmatpush.bf16.msrb.mxu3 %v2991_v53  ;;  %v555_v3 = vmul.f32 0.044677734, %v551_v51  ;;  %v3492_v53 = vld [vmem:[%s5232_s3 + $0x3a4] sm:$0xf] }
 0x108   :  { %v1166_v11 = vadd.f32 %v1165_v2, %v753_v52  ;;  %v1228_v20 = vmul.f32 0.796875, %v1224_v9  ;;  %v1229_v21 = vmul.f32 0.796875, %v1225_v10  ;;  %v554_v2 = vmul.f32 0.044677734, %v550_v49 }
 0x109   :  { %v1178_v12 = vpop.f32.mrf.mxu3  ;;  %v1141_v14 = vpop.f32.mrf.mxu0  ;;  %1732 = vmatpush.bf16.msrb.mxu1 %v2807_v34  ;;  %v2911_v9 = vor.u32 %v3482_v61, %v2908_v62  ;;  %v579_v10 = vunpack.c.h.bf16 %v576_v48  ;;  %v2884_v48 = vld [vmem:[%s5232_s3 + $0x328] sm:$0xf0]  ;;  %v2951_v62 = vor.u32 %v3492_v53, %v2948_v55 }
 0x10a   :  { %v1179_v22 = vadd.f32 %v1178_v12, %v1166_v11  ;;  %v1232_v31 = vpack.c.bf16 %v1229_v21, %v1228_v20  ;;  %1739 = vmatpush.bf16.msrb.mxu2 %v2919_v60  ;;  %v3480_v12 = vld [vmem:[%s5232_s3 + $0x344] sm:$0xf]  ;;  %v2900_v14 = vld [vmem:[%s5232_s3 + $0x348] sm:$0xf0]  ;;  %v557_v21 = vpack.c.bf16 %v555_v3, %v554_v2 }
 0x10b   :  { %v1154_v16 = vpop.f32.mrf.mxu1  ;;  %1752 = vmatpush.bf16.msrb.mxu3 %v2983_v13  ;;  %v2903_v24 = vor.u32 %v3480_v12, %v2900_v14 }
 0x10c   :  { %v1183_v32 = vpack.c.bf16 %v1179_v22, %v1153_v1  ;;  %v1234_v42 = vunpack.c.l.bf16 %v1232_v31  ;;  %v1235_v44 = vunpack.c.h.bf16 %v1232_v31  ;;  %v2972_v1 = vld [vmem:[%s5232_s3 + $0x3d8] sm:$0xf0]  ;;  %v560_v33 = vunpack.c.l.bf16 %v557_v21 }
 0x10d   :  { %v2975_v11 = vor.u32 %v3498_v0, %v2972_v1  ;;  %v2892_v31 = vld [vmem:[%s5232_s3 + $0x338] sm:$0xf0]  ;;  %v561_v34 = vunpack.c.h.bf16 %v557_v21 }
 0x10e   :  { %v4702_v45 = vunpack.c.l.bf16 %v1183_v32  ;;  %v4704_v46 = vunpack.c.h.bf16 %v1183_v32  ;;  %3504 = vtanh.f32 %v1234_v42  ;;  %1740 = vmatpush.bf16.msrb.mxu2 %v2911_v9  ;;  %v3494_v32 = vld [vmem:[%s5232_s3 + $0x3b4] sm:$0xf]  ;;  %v2895_v35 = vor.u32 %v3478_v30, %v2892_v31  ;;  %v2876_v0 = vld [vmem:[%s5232_s3 + $0x318] sm:$0xf0] }
 0x10f   :  { %v1167_v52 = vpop.f32.mrf.mxu2  ;;  %3506 = vtanh.f32 %v1235_v44  ;;  %1753 = vmatpush.bf16.msrb.mxu3 %v2975_v11  ;;  %v2959_v44 = vor.u32 %v3494_v32, %v2956_v41  ;;  %v564_v57 = vadd.f32 %v560_v33, %v4521_v28 }
 0x110   :  { %v1190_v43 = vmul.f32 %v4702_v45, %v4702_v45  ;;  %v1191_v58 = vmul.f32 %v4704_v46, %v4704_v46  ;;  %3508 = vtanh.f32 %v578_v4 }
 0x111   :  { %v1180_v59 = vpop.f32.mrf.mxu3  ;;  %3510 = vtanh.f32 %v579_v10 }
 0x112   :  { %v1193_v63 = vpack.c.bf16 %v1191_v58, %v1190_v43  ;;  %1741 = vmatpush.bf16.msrb.mxu2 %v2903_v24  ;;  %v565_v43 = vadd.f32 %v561_v34, %v4524_v29  ;;  %v2887_v58 = vor.u32 %v3476_v47, %v2884_v48  ;;  %v3472_v24 = vld [vmem:[%s5232_s3 + $0x304] sm:$0xf]  ;;  %v3341_v48 = vld [vmem:[%s5232_s3 + $0xe4] sm:$0xf0] }
 0x113   :  { %1754 = vmatpush.bf16.msrb.mxu3 %v2967_v25  ;;  %v2868_v25 = vld [vmem:[%s5232_s3 + $0x308] sm:$0xf0] }
 0x114   :  { %v1196_v7 = vunpack.c.l.bf16 %v1193_v63  ;;  %v1197_v8 = vunpack.c.h.bf16 %v1193_v63  ;;  %v3505_v15 = vpop.eup %3504  ;;  %v3474_v63 = vld [vmem:[%s5232_s3 + $0x314] sm:$0xf]  ;;  %v567_v9 = vpack.c.bf16 %v565_v43, %v564_v57 }
 0x115   :  { %v3507_v20 = vpop.eup %3506  ;;  %v2879_v14 = vor.u32 %v3474_v63, %v2876_v0 }
 0x116   :  { %v1200_v16 = vmul.f32 %v1196_v7, %v4702_v45  ;;  %v1201_v17 = vmul.f32 %v1197_v8, %v4704_v46  ;;  %v1242_v23 = vpack.c.bf16 %v3507_v20, %v3505_v15  ;;  %v3509_v49 = vpop.eup %3508  ;;  %1742 = vmatpush.bf16.msrb.mxu2 %v2895_v35  ;;  %v3490_v7 = vld [vmem:[%s5232_s3 + $0x394] sm:$0xf]  ;;  %v2940_v8 = vld [vmem:[%s5232_s3 + $0x398] sm:$0xf0]  ;;  %v3050_v15 = vld [vmem:[%s5232_s3 + $0x70] sm:$0xf]  ;;  %v571_v35 = vunpack.c.h.bf16 %v567_v9 }
 0x117   :  { %v3511_v56 = vpop.eup %3510  ;;  %1755 = vmatpush.bf16.msrb.mxu3 %v2959_v44  ;;  %v2943_v18 = vor.u32 %v3490_v7, %v2940_v8  ;;  %v3337_v7 = vld [vmem:[%s5232_s3 + $0xc4] sm:$0xf0] }
 0x118   :  { %v1203_v22 = vpack.c.bf16 %v1201_v17, %v1200_v16  ;;  %v1244_v27 = vunpack.c.l.bf16 %v1242_v23  ;;  %v1245_v54 = vunpack.c.h.bf16 %v1242_v23  ;;  %v586_v10 = vpack.c.bf16 %v3511_v56, %v3509_v49  ;;  %v3327_v16 = vld [vmem:[%s5232_s3 + $0x74] sm:$0xf0]  ;;  %v3114_v17 = vld [vmem:[%s5232_s3 + $0xf0] sm:$0xf] }
 0x119   :  { %v3343_v23 = vld [vmem:[%s5232_s3 + $0xf4] sm:$0xf0]  ;;  %v3051_v41 = vor.u32 %v3327_v16, %v3050_v15  ;;  %v575_v57 = vmul.f32 0.796875, %v571_v35  ;;  %v3018_v15 = vld [vmem:[%s5232_s3 + $0x30] sm:$0xf] }
 0x11a   :  { %v1206_v26 = vunpack.c.l.bf16 %v1203_v22  ;;  %v1207_v50 = vunpack.c.h.bf16 %v1203_v22  ;;  %v1248_v40 = vadd.f32 1.0, %v1244_v27  ;;  %v1249_v42 = vadd.f32 1.0, %v1245_v54  ;;  %1743 = vmatpush.bf16.msrb.mxu2 %v2887_v58  ;;  %v2932_v27 = vld [vmem:[%s5232_s3 + $0x388] sm:$0xf0] }
 0x11b   :  { %1756 = vmatpush.bf16.msrb.mxu3 %v2951_v62  ;;  %v588_v54 = vunpack.c.l.bf16 %v586_v10  ;;  %v589_v30 = vunpack.c.h.bf16 %v586_v10 }
 0x11c   :  { %v1210_v38 = vmul.f32 0.044677734, %v1206_v26  ;;  %v1211_v39 = vmul.f32 0.044677734, %v1207_v50  ;;  %v1252_v52 = vpack.c.bf16 %v1249_v42, %v1248_v40  ;;  %v570_v26 = vunpack.c.l.bf16 %v567_v9  ;;  %v3488_v50 = vld [vmem:[%s5232_s3 + $0x384] sm:$0xf] }
 0x11d   :  { %v2871_v40 = vor.u32 %v3472_v24, %v2868_v25  ;;  %v2935_v49 = vor.u32 %v3488_v50, %v2932_v27  ;;  %v592_v53 = vadd.f32 1.0, %v588_v54  ;;  %v593_v55 = vadd.f32 1.0, %v589_v30  ;;  %v3010_v50 = vld [vmem:[%s5232_s3 + $0x20] sm:$0xf]  ;;  %v3317_v27 = vld [vmem:[%s5232_s3 + $0x24] sm:$0xf0] }
 0x11e   :  { %v1213_v51 = vpack.c.bf16 %v1211_v39, %v1210_v38  ;;  %v1254_v13 = vunpack.c.l.bf16 %v1252_v52  ;;  %v1255_v61 = vunpack.c.h.bf16 %v1252_v52  ;;  %1744 = vmatpush.bf16.msrb.mxu2 %v2879_v14  ;;  %v3115_v38 = vor.u32 %v3343_v23, %v3114_v17  ;;  %v3042_v39 = vld [vmem:[%s5232_s3 + $0x60] sm:$0xf] }
 0x11f   :  { %1757 = vmatpush.bf16.msrb.mxu3 %v2943_v18  ;;  %v574_v56 = vmul.f32 0.796875, %v570_v26  ;;  %v596_v62 = vpack.c.bf16 %v593_v55, %v592_v53  ;;  %v3319_v18 = vld [vmem:[%s5232_s3 + $0x34] sm:$0xf0]  ;;  %v3074_v30 = vld [vmem:[%s5232_s3 + $0xa0] sm:$0xf]  ;;  %v3011_v35 = vor.u32 %v3317_v27, %v3010_v50 }
 0x120   :  { %v1216_v59 = vunpack.c.l.bf16 %v1213_v51  ;;  %v1217_v60 = vunpack.c.h.bf16 %v1213_v51  ;;  %v1258_v3 = vmul.f32 0.5, %v1254_v13  ;;  %v1259_v4 = vmul.f32 0.5, %v1255_v61  ;;  %v3098_v13 = vld [vmem:[%s5232_s3 + $0xd0] sm:$0xf]  ;;  %v3339_v61 = vld [vmem:[%s5232_s3 + $0xd4] sm:$0xf0] }
 0x121   :  { %v577_v63 = vpack.c.bf16 %v575_v57, %v574_v56  ;;  %v598_v9 = vunpack.c.l.bf16 %v596_v62  ;;  %v599_v16 = vunpack.c.h.bf16 %v596_v62  ;;  %v3019_v25 = vor.u32 %v3319_v18, %v3018_v15  ;;  %v2994_v55 = vld [vmem:[%s5232_s3] sm:$0xf]  ;;  %v3313_v56 = vld [vmem:[%s5232_s3 + $0x4] sm:$0xf0]  ;;  %v3108_v50 = vld [vmem:[%s5232_s3 + $0xe8] sm:$0xf0] }
 0x122   :  { %v1220_v1 = vadd.f32 %v1216_v59, %v4702_v45  ;;  %v1221_v2 = vadd.f32 %v1217_v60, %v4704_v46  ;;  %v1262_v12 = vpack.c.bf16 %v1259_v4, %v1258_v3  ;;  %v3034_v59 = vld [vmem:[%s5232_s3 + $0x50] sm:$0xf]  ;;  %v3323_v60 = vld [vmem:[%s5232_s3 + $0x54] sm:$0xf0]  ;;  %1745 = vmatpush.bf16.msrb.mxu2 %v2871_v40  ;;  %v3321_v3 = vld [vmem:[%s5232_s3 + $0x44] sm:$0xf0] }
 0x123   :  { %1758 = vmatpush.bf16.msrb.mxu3 %v2935_v49  ;;  %v3035_v0 = vor.u32 %v3323_v60, %v3034_v59  ;;  %v3090_v4 = vld [vmem:[%s5232_s3 + $0xc0] sm:$0xf]  ;;  %v581_v17 = vunpack.c.h.bf16 %v577_v63  ;;  %v602_v24 = vmul.f32 0.5, %v598_v9  ;;  %v603_v54 = vmul.f32 0.5, %v599_v16  ;;  %v3066_v40 = vld [vmem:[%s5232_s3 + $0x90] sm:$0xf] }
 0x124   :  { %v1223_v11 = vpack.c.bf16 %v1221_v2, %v1220_v1  ;;  %v1264_v21 = vunpack.c.l.bf16 %v1262_v12  ;;  %v1265_v22 = vunpack.c.h.bf16 %v1262_v12  ;;  %v3099_v1 = vor.u32 %v3339_v61, %v3098_v13  ;;  %v3026_v2 = vld [vmem:[%s5232_s3 + $0x40] sm:$0xf]  ;;  %v3178_v13 = vld [vmem:[%s5232_s3 + $0x170] sm:$0xf]  ;;  %v3359_v61 = vld [vmem:[%s5232_s3 + $0x174] sm:$0xf0] }
 0x125   :  { %v3027_v12 = vor.u32 %v3321_v3, %v3026_v2  ;;  %v3091_v14 = vor.u32 %v3337_v7, %v3090_v4  ;;  %v3058_v57 = vld [vmem:[%s5232_s3 + $0x80] sm:$0xf]  ;;  %v3375_v2 = vld [vmem:[%s5232_s3 + $0x1f4] sm:$0xf0]  ;;  %v3326_v3 = vld [vmem:[%s5232_s3 + $0x74] sm:$0xf]  ;;  %v2995_v4 = vor.u32 %v3313_v56, %v2994_v55  ;;  %v3179_v16 = vor.u32 %v3359_v61, %v3178_v13 }
 0x126   :  { %v1226_v19 = vunpack.c.l.bf16 %v1223_v11  ;;  %v1227_v20 = vunpack.c.h.bf16 %v1223_v11  ;;  %v1268_v33 = vmul.f32 %v1264_v21, %v4485_v5  ;;  %v1269_v34 = vmul.f32 %v1265_v22, %v4487_v6  ;;  %v3325_v5 = vld [vmem:[%s5232_s3 + $0x64] sm:$0xf0]  ;;  %v3106_v6 = vld [vmem:[%s5232_s3 + $0xe0] sm:$0xf]  ;;  %v3342_v9 = vld [vmem:[%s5232_s3 + $0xf4] sm:$0xf] }
 0x127   :  { %v3043_v43 = vor.u32 %v3325_v5, %v3042_v39  ;;  %v3107_v58 = vor.u32 %v3341_v48, %v3106_v6  ;;  %v580_v11 = vunpack.c.l.bf16 %v577_v63  ;;  %v3315_v39 = vld [vmem:[%s5232_s3 + $0x14] sm:$0xf0]  ;;  %v606_v5 = vpack.c.bf16 %v603_v54, %v602_v24  ;;  %v3170_v18 = vld [vmem:[%s5232_s3 + $0x160] sm:$0xf]  ;;  %v3324_v24 = vld [vmem:[%s5232_s3 + $0x64] sm:$0xf] }
 0x128   :  { %v1230_v31 = vmul.f32 0.796875, %v1226_v19  ;;  %v1231_v32 = vmul.f32 0.796875, %v1227_v20  ;;  %v4818_v44 = vpack.c.bf16 %v1268_v33, %v1268_v33  ;;  %v4820_v47 = vpack.c.bf16 %v1269_v34, %v1269_v34  ;;  %v3082_v19 = vld [vmem:[%s5232_s3 + $0xb0] sm:$0xf]  ;;  %v3335_v20 = vld [vmem:[%s5232_s3 + $0xb4] sm:$0xf0] }
 0x129   :  { %v3083_v26 = vor.u32 %v3335_v20, %v3082_v19  ;;  %v608_v59 = vunpack.c.l.bf16 %v606_v5  ;;  %v609_v60 = vunpack.c.h.bf16 %v606_v5  ;;  %v3357_v19 = vld [vmem:[%s5232_s3 + $0x164] sm:$0xf0]  ;;  %v3100_v5 = vld [vmem:[%s5232_s3 + $0xd8] sm:$0xf0]  ;;  %v3218_v56 = vld [vmem:[%s5232_s3 + $0x1c0] sm:$0xf] }
 0x12a   :  { %v1233_v42 = vpack.c.bf16 %v1231_v32, %v1230_v31  ;;  %1668 = vmatmul.bf16.vlgmr.msra.gmra.mxu0 %v4818_v44  ;;  %1681 = vmatmul.bf16.vlgmr.msra.gmra.mxu1 %v4820_v47  ;;  %v3333_v31 = vld [vmem:[%s5232_s3 + $0xa4] sm:$0xf0] }
 0x12b   :  { %2084 = vmatpush.bf16.msra.mxu0 %v3051_v41  ;;  %2097 = vmatpush.bf16.msra.mxu1 %v3115_v38  ;;  %v3075_v41 = vor.u32 %v3333_v31, %v3074_v30  ;;  %v3002_v38 = vld [vmem:[%s5232_s3 + $0x10] sm:$0xf]  ;;  %v613_v15 = vmul.f32 %v609_v60, %v4351_v37  ;;  %v3234_v37 = vld [vmem:[%s5232_s3 + $0x1e0] sm:$0xf]  ;;  %v3171_v30 = vor.u32 %v3357_v19, %v3170_v18  ;;  %v3092_v60 = vld [vmem:[%s5232_s3 + $0xc8] sm:$0xf0] }
 0x12c   :  { %v1236_v51 = vunpack.c.l.bf16 %v1233_v42  ;;  %v1237_v52 = vunpack.c.h.bf16 %v1233_v42  ;;  %v3331_v42 = vld [vmem:[%s5232_s3 + $0x94] sm:$0xf0] }
 0x12d   :  { %v3067_v53 = vor.u32 %v3331_v42, %v3066_v40  ;;  %v4967_v54 = vpack.c.bf16 %v613_v15, %v613_v15  ;;  %v3371_v40 = vld [vmem:[%s5232_s3 + $0x1d4] sm:$0xf0]  ;;  %v3322_v42 = vld [vmem:[%s5232_s3 + $0x54] sm:$0xf]  ;;  %v3138_v15 = vld [vmem:[%s5232_s3 + $0x120] sm:$0xf] }
 0x12e   :  { %3512 = vtanh.f32 %v1236_v51 }
 0x12f   :  { %3514 = vtanh.f32 %v1237_v52  ;;  %2085 = vmatpush.bf16.msra.mxu0 %v3043_v43  ;;  %2098 = vmatpush.bf16.msra.mxu1 %v3107_v58  ;;  %v3003_v52 = vor.u32 %v3315_v39, %v3002_v38  ;;  %v3329_v43 = vld [vmem:[%s5232_s3 + $0x84] sm:$0xf0]  ;;  %v3226_v39 = vld [vmem:[%s5232_s3 + $0x1d0] sm:$0xf] }
 0x130   :  { %3516 = vtanh.f32 %v580_v11  ;;  %v3059_v7 = vor.u32 %v3329_v43, %v3058_v57  ;;  %v3369_v57 = vld [vmem:[%s5232_s3 + $0x1c4] sm:$0xf0]  ;;  %v3320_v43 = vld [vmem:[%s5232_s3 + $0x44] sm:$0xf] }
 0x131   :  { %3518 = vtanh.f32 %v581_v17  ;;  %v3219_v61 = vor.u32 %v3369_v57, %v3218_v56  ;;  %v3060_v56 = vld [vmem:[%s5232_s3 + $0x88] sm:$0xf0]  ;;  %v3358_v57 = vld [vmem:[%s5232_s3 + $0x174] sm:$0xf] }
 0x133   :  { %2086 = vmatpush.bf16.msra.mxu0 %v3035_v0  ;;  %2099 = vmatpush.bf16.msra.mxu1 %v3099_v1  ;;  %v3242_v1 = vld [vmem:[%s5232_s3 + $0x1f0] sm:$0xf] }
 0x134   :  { %v3513_v8 = vpop.eup %3512  ;;  %v3243_v17 = vor.u32 %v3375_v2, %v3242_v1 }
 0x135   :  { %v3515_v10 = vpop.eup %3514 }
 0x136   :  { %v1243_v21 = vpack.c.bf16 %v3515_v10, %v3513_v8  ;;  %v3517_v6 = vpop.eup %3516  ;;  %v3052_v8 = vld [vmem:[%s5232_s3 + $0x78] sm:$0xf0] }
 0x137   :  { %2087 = vmatpush.bf16.msra.mxu0 %v3027_v12  ;;  %2100 = vmatpush.bf16.msra.mxu1 %v3091_v14  ;;  %v3519_v48 = vpop.eup %3518  ;;  %v3116_v10 = vld [vmem:[%s5232_s3 + $0xf8] sm:$0xf0]  ;;  %v612_v14 = vmul.f32 %v608_v59, %v4349_v36  ;;  %v3336_v59 = vld [vmem:[%s5232_s3 + $0xc4] sm:$0xf] }
 0x138   :  { %v1246_v22 = vunpack.c.l.bf16 %v1243_v21  ;;  %v1247_v23 = vunpack.c.h.bf16 %v1243_v21  ;;  %v587_v62 = vpack.c.bf16 %v3519_v48, %v3517_v6  ;;  %v3119_v36 = vor.u32 %v3342_v9, %v3116_v10  ;;  %v3020_v9 = vld [vmem:[%s5232_s3 + $0x38] sm:$0xf0]  ;;  %v3334_v10 = vld [vmem:[%s5232_s3 + $0xb4] sm:$0xf] }
 0x139   :  { %v4965_v27 = vpack.c.bf16 %v612_v14, %v612_v14  ;;  %v3227_v48 = vor.u32 %v3371_v40, %v3226_v39 }
 0x13a   :  { %v1250_v32 = vadd.f32 1.0, %v1246_v22  ;;  %v1251_v33 = vadd.f32 1.0, %v1247_v23  ;;  %1720 = vmatmul.bf16.vlgmr.msrb.gmra.mxu0 %v4818_v44  ;;  %1733 = vmatmul.bf16.vlgmr.msrb.gmra.mxu1 %v4820_v47  ;;  %v590_v20 = vunpack.c.l.bf16 %v587_v62  ;;  %v591_v21 = vunpack.c.h.bf16 %v587_v62  ;;  %v3373_v23 = vld [vmem:[%s5232_s3 + $0x1e4] sm:$0xf0]  ;;  %v3146_v62 = vld [vmem:[%s5232_s3 + $0x130] sm:$0xf] }
 0x13b   :  { %2088 = vmatpush.bf16.msra.mxu0 %v3019_v25  ;;  %2101 = vmatpush.bf16.msra.mxu1 %v3083_v26  ;;  %v3044_v25 = vld [vmem:[%s5232_s3 + $0x68] sm:$0xf0]  ;;  %v3340_v26 = vld [vmem:[%s5232_s3 + $0xe4] sm:$0xf]  ;;  %v3235_v31 = vor.u32 %v3373_v23, %v3234_v37 }
 0x13c   :  { %v1253_v34 = vpack.c.bf16 %v1251_v33, %v1250_v32  ;;  %v3162_v32 = vld [vmem:[%s5232_s3 + $0x150] sm:$0xf]  ;;  %v3355_v33 = vld [vmem:[%s5232_s3 + $0x154] sm:$0xf0]  ;;  %v3111_v38 = vor.u32 %v3340_v26, %v3108_v50  ;;  %v3012_v37 = vld [vmem:[%s5232_s3 + $0x28] sm:$0xf0] }
 0x13d   :  { %v3163_v6 = vor.u32 %v3355_v33, %v3162_v32  ;;  %v3332_v23 = vld [vmem:[%s5232_s3 + $0xa4] sm:$0xf]  ;;  %v3130_v50 = vld [vmem:[%s5232_s3 + $0x110] sm:$0xf] }
 0x13e   :  { %v1256_v44 = vunpack.c.l.bf16 %v1253_v34  ;;  %v1257_v47 = vunpack.c.h.bf16 %v1253_v34  ;;  %v594_v34 = vadd.f32 1.0, %v590_v20 }
 0x13f   :  { %2089 = vmatpush.bf16.msra.mxu0 %v3011_v35  ;;  %2102 = vmatpush.bf16.msra.mxu1 %v3075_v41  ;;  %v595_v35 = vadd.f32 1.0, %v591_v21  ;;  %v3047_v41 = vor.u32 %v3324_v24, %v3044_v25  ;;  %v3202_v21 = vld [vmem:[%s5232_s3 + $0x1a0] sm:$0xf]  ;;  %v3076_v24 = vld [vmem:[%s5232_s3 + $0xa8] sm:$0xf0] }
 0x140   :  { %v1260_v49 = vmul.f32 0.5, %v1256_v44  ;;  %v1261_v51 = vmul.f32 0.5, %v1257_v47  ;;  %v3036_v44 = vld [vmem:[%s5232_s3 + $0x58] sm:$0xf0]  ;;  %v3338_v47 = vld [vmem:[%s5232_s3 + $0xd4] sm:$0xf]  ;;  %v3079_v33 = vor.u32 %v3332_v23, %v3076_v24 }
 0x141   :  { %v3103_v55 = vor.u32 %v3338_v47, %v3100_v5  ;;  %v3186_v47 = vld [vmem:[%s5232_s3 + $0x180] sm:$0xf]  ;;  %v3212_v23 = vld [vmem:[%s5232_s3 + $0x1b8] sm:$0xf0] }
 0x142   :  { %v1263_v58 = vpack.c.bf16 %v1261_v51, %v1260_v49  ;;  %v3154_v49 = vld [vmem:[%s5232_s3 + $0x140] sm:$0xf]  ;;  %v3353_v51 = vld [vmem:[%s5232_s3 + $0x144] sm:$0xf0] }
 0x143   :  { %2090 = vmatpush.bf16.msra.mxu0 %v3003_v52  ;;  %2103 = vmatpush.bf16.msra.mxu1 %v3067_v53  ;;  %v597_v52 = vpack.c.bf16 %v595_v35, %v594_v34  ;;  %v3039_v53 = vor.u32 %v3322_v42, %v3036_v44  ;;  %v3155_v13 = vor.u32 %v3353_v51, %v3154_v49  ;;  %v3314_v34 = vld [vmem:[%s5232_s3 + $0x14] sm:$0xf]  ;;  %v3004_v35 = vld [vmem:[%s5232_s3 + $0x18] sm:$0xf0]  ;;  %v3122_v42 = vld [vmem:[%s5232_s3 + $0x100] sm:$0xf] }
 0x144   :  { %v1266_v63 = vunpack.c.l.bf16 %v1263_v58  ;;  %v1267_v0 = vunpack.c.h.bf16 %v1263_v58  ;;  %v3028_v58 = vld [vmem:[%s5232_s3 + $0x48] sm:$0xf0]  ;;  %v3345_v44 = vld [vmem:[%s5232_s3 + $0x104] sm:$0xf0]  ;;  %v3312_v51 = vld [vmem:[%s5232_s3 + $0x4] sm:$0xf] }
 0x145   :  { %v601_v1 = vunpack.c.h.bf16 %v597_v52  ;;  %v3031_v2 = vor.u32 %v3320_v43, %v3028_v58  ;;  %v3361_v49 = vld [vmem:[%s5232_s3 + $0x184] sm:$0xf0]  ;;  %v3180_v43 = vld [vmem:[%s5232_s3 + $0x178] sm:$0xf0]  ;;  %v3374_v58 = vld [vmem:[%s5232_s3 + $0x1f4] sm:$0xf] }
 0x146   :  { %v1270_v11 = vmul.f32 %v1266_v63, %v4702_v45  ;;  %v1271_v12 = vmul.f32 %v1267_v0, %v4704_v46  ;;  %v3055_v46 = vor.u32 %v3326_v3, %v3052_v8  ;;  %v3351_v63 = vld [vmem:[%s5232_s3 + $0x134] sm:$0xf0]  ;;  %v600_v0 = vunpack.c.l.bf16 %v597_v52  ;;  %v3318_v8 = vld [vmem:[%s5232_s3 + $0x34] sm:$0xf]  ;;  %v2996_v52 = vld [vmem:[%s5232_s3 + $0x8] sm:$0xf0] }
 0x147   :  { %2091 = vmatpush.bf16.msra.mxu0 %v2995_v4  ;;  %2104 = vmatpush.bf16.msra.mxu1 %v3059_v7  ;;  %v3095_v3 = vor.u32 %v3336_v59, %v3092_v60  ;;  %v3210_v4 = vld [vmem:[%s5232_s3 + $0x1b0] sm:$0xf]  ;;  %v3367_v7 = vld [vmem:[%s5232_s3 + $0x1b4] sm:$0xf0]  ;;  %v605_v18 = vmul.f32 0.5, %v601_v1  ;;  %v3023_v19 = vor.u32 %v3318_v8, %v3020_v9  ;;  %v3123_v60 = vor.u32 %v3345_v44, %v3122_v42 }
 0x148   :  { %v4941_v22 = vpack.c.bf16 %v1270_v11, %v1270_v11  ;;  %v4943_v45 = vpack.c.bf16 %v1271_v12, %v1271_v12  ;;  %v3084_v11 = vld [vmem:[%s5232_s3 + $0xb8] sm:$0xf0]  ;;  %v3147_v12 = vor.u32 %v3351_v63, %v3146_v62  ;;  %v3211_v14 = vor.u32 %v3367_v7, %v3210_v4  ;;  %v3172_v4 = vld [vmem:[%s5232_s3 + $0x168] sm:$0xf0]  ;;  %v3360_v42 = vld [vmem:[%s5232_s3 + $0x184] sm:$0xf] }
 0x149   :  { %v3087_v20 = vor.u32 %v3334_v10, %v3084_v11  ;;  %v3244_v59 = vld [vmem:[%s5232_s3 + $0x1f8] sm:$0xf0]  ;;  %v2999_v62 = vor.u32 %v3312_v51, %v2996_v52  ;;  %v3183_v1 = vor.u32 %v3358_v57, %v3180_v43  ;;  %v3236_v7 = vld [vmem:[%s5232_s3 + $0x1e8] sm:$0xf0]  ;;  %v3354_v11 = vld [vmem:[%s5232_s3 + $0x154] sm:$0xf] }
 0x14a   :  { %1694 = vmatmul.bf16.vlgmr.msra.gmra.mxu2 %v4941_v22  ;;  %1707 = vmatmul.bf16.vlgmr.msra.gmra.mxu3 %v4943_v45  ;;  %v3188_v44 = vld [vmem:[%s5232_s3 + $0x188] sm:$0xf0] }
 0x14b   :  { %2110 = vmatpush.bf16.msra.mxu2 %v3179_v16  ;;  %2123 = vmatpush.bf16.msra.mxu3 %v3243_v17  ;;  %v3349_v16 = vld [vmem:[%s5232_s3 + $0x124] sm:$0xf0]  ;;  %v604_v17 = vmul.f32 0.5, %v600_v0 }
 0x14c   :  { %2136 = vmatpush.bf16.msrb.mxu0 %v3055_v46  ;;  %2149 = vmatpush.bf16.msrb.mxu1 %v3119_v36  ;;  %v3365_v46 = vld [vmem:[%s5232_s3 + $0x1a4] sm:$0xf0]  ;;  %v3316_v36 = vld [vmem:[%s5232_s3 + $0x24] sm:$0xf]  ;;  %v3139_v25 = vor.u32 %v3349_v16, %v3138_v15  ;;  %v3228_v15 = vld [vmem:[%s5232_s3 + $0x1d8] sm:$0xf0] }
 0x14d   :  { %2092 = vmatmul.bf16.vlgmr.msra.gmra.mxu0 %v4965_v27  ;;  %2105 = vmatmul.bf16.vlgmr.msra.gmra.mxu1 %v4967_v54  ;;  %v3203_v26 = vor.u32 %v3365_v46, %v3202_v21  ;;  %v3015_v32 = vor.u32 %v3316_v36, %v3012_v37  ;;  %v3350_v46 = vld [vmem:[%s5232_s3 + $0x134] sm:$0xf]  ;;  %v3148_v36 = vld [vmem:[%s5232_s3 + $0x138] sm:$0xf0] }
 0x14e   :  { %v3366_v37 = vld [vmem:[%s5232_s3 + $0x1b4] sm:$0xf]  ;;  %v3151_v24 = vor.u32 %v3350_v46, %v3148_v36 }
 0x14f   :  { %2111 = vmatpush.bf16.msra.mxu2 %v3171_v30  ;;  %2124 = vmatpush.bf16.msra.mxu3 %v3235_v31  ;;  %v3347_v30 = vld [vmem:[%s5232_s3 + $0x114] sm:$0xf0]  ;;  %v607_v31 = vpack.c.bf16 %v605_v18, %v604_v17  ;;  %v3352_v18 = vld [vmem:[%s5232_s3 + $0x144] sm:$0xf] }
 0x150   :  { %2137 = vmatpush.bf16.msrb.mxu0 %v3047_v41  ;;  %2150 = vmatpush.bf16.msrb.mxu1 %v3111_v38  ;;  %v3330_v41 = vld [vmem:[%s5232_s3 + $0x94] sm:$0xf]  ;;  %v3068_v38 = vld [vmem:[%s5232_s3 + $0x98] sm:$0xf0]  ;;  %v3131_v39 = vor.u32 %v3347_v30, %v3130_v50  ;;  %v3140_v50 = vld [vmem:[%s5232_s3 + $0x128] sm:$0xf0] }
 0x151   :  { %v610_v5 = vunpack.c.l.bf16 %v607_v31  ;;  %v3364_v30 = vld [vmem:[%s5232_s3 + $0x1a4] sm:$0xf] }
 0x153   :  { %2112 = vmatpush.bf16.msra.mxu2 %v3163_v6  ;;  %2125 = vmatpush.bf16.msra.mxu3 %v3227_v48  ;;  %v3007_v6 = vor.u32 %v3314_v34, %v3004_v35  ;;  %v3071_v48 = vor.u32 %v3330_v41, %v3068_v38  ;;  %v3362_v34 = vld [vmem:[%s5232_s3 + $0x194] sm:$0xf]  ;;  %v3196_v35 = vld [vmem:[%s5232_s3 + $0x198] sm:$0xf0] }
 0x154   :  { %2138 = vmatpush.bf16.msrb.mxu0 %v3039_v53  ;;  %2151 = vmatpush.bf16.msrb.mxu1 %v3103_v55  ;;  %v611_v53 = vunpack.c.h.bf16 %v607_v31  ;;  %v3328_v55 = vld [vmem:[%s5232_s3 + $0x84] sm:$0xf]  ;;  %v3204_v31 = vld [vmem:[%s5232_s3 + $0x1a8] sm:$0xf0]  ;;  %v3199_v38 = vor.u32 %v3362_v34, %v3196_v35 }
 0x155   :  { %v3063_v63 = vor.u32 %v3328_v55, %v3060_v56 }
 0x156   :  { %v615_v0 = vmul.f32 %v611_v53, %v4524_v29 }
 0x157   :  { %2113 = vmatpush.bf16.msra.mxu2 %v3155_v13  ;;  %2126 = vmatpush.bf16.msra.mxu3 %v3219_v61  ;;  %v3187_v13 = vor.u32 %v3361_v49, %v3186_v47  ;;  %v614_v61 = vmul.f32 %v610_v5, %v4521_v28  ;;  %v3372_v28 = vld [vmem:[%s5232_s3 + $0x1e4] sm:$0xf]  ;;  %v3191_v5 = vor.u32 %v3360_v42, %v3188_v44 }
 0x158   :  { %2139 = vmatpush.bf16.msrb.mxu0 %v3031_v2  ;;  %2152 = vmatpush.bf16.msrb.mxu1 %v3095_v3  ;;  %v3247_v2 = vor.u32 %v3374_v58, %v3244_v59  ;;  %v3356_v3 = vld [vmem:[%s5232_s3 + $0x164] sm:$0xf]  ;;  %v619_v8 = vpack.c.bf16 %v615_v0, %v615_v0  ;;  %v3239_v10 = vor.u32 %v3372_v28, %v3236_v7 }
 0x159   :  { %v618_v29 = vpack.c.bf16 %v614_v61, %v614_v61  ;;  %v3175_v9 = vor.u32 %v3356_v3, %v3172_v4 }
 0x15a   :  { %1746 = vmatmul.bf16.vlgmr.msrb.gmra.mxu2 %v4941_v22  ;;  %1759 = vmatmul.bf16.vlgmr.msrb.gmra.mxu3 %v4943_v45  ;;  %v3194_v22 = vld [vmem:[%s5232_s3 + $0x190] sm:$0xf]  ;;  %v3363_v45 = vld [vmem:[%s5232_s3 + $0x194] sm:$0xf0] }
 0x15b   :  { %2114 = vmatpush.bf16.msra.mxu2 %v3147_v12  ;;  %2127 = vmatpush.bf16.msra.mxu3 %v3211_v14  ;;  %v3195_v40 = vor.u32 %v3363_v45, %v3194_v22  ;;  %v3164_v12 = vld [vmem:[%s5232_s3 + $0x158] sm:$0xf0]  ;;  %v3370_v14 = vld [vmem:[%s5232_s3 + $0x1d4] sm:$0xf] }
 0x15c   :  { %2140 = vmatpush.bf16.msrb.mxu0 %v3023_v19  ;;  %2153 = vmatpush.bf16.msrb.mxu1 %v3087_v20  ;;  %v3167_v16 = vor.u32 %v3354_v11, %v3164_v12  ;;  %v3231_v17 = vor.u32 %v3370_v14, %v3228_v15  ;;  %v3156_v19 = vld [vmem:[%s5232_s3 + $0x148] sm:$0xf0]  ;;  %v3368_v20 = vld [vmem:[%s5232_s3 + $0x1c4] sm:$0xf]  ;;  %v3346_v22 = vld [vmem:[%s5232_s3 + $0x114] sm:$0xf] }
 0x15d   :  { %v3132_v45 = vld [vmem:[%s5232_s3 + $0x118] sm:$0xf0] }
 0x15e   :  { %v3135_v41 = vor.u32 %v3346_v22, %v3132_v45 }
 0x15f   :  { %2115 = vmatpush.bf16.msra.mxu2 %v3139_v25  ;;  %2128 = vmatpush.bf16.msra.mxu3 %v3203_v26  ;;  %v3215_v25 = vor.u32 %v3366_v37, %v3212_v23  ;;  %v3348_v26 = vld [vmem:[%s5232_s3 + $0x124] sm:$0xf] }
 0x160   :  { %2141 = vmatpush.bf16.msrb.mxu0 %v3015_v32  ;;  %2154 = vmatpush.bf16.msrb.mxu1 %v3079_v33  ;;  %v3143_v32 = vor.u32 %v3348_v26, %v3140_v50  ;;  %v3207_v33 = vor.u32 %v3364_v30, %v3204_v31 }
 0x163   :  { %2116 = vmatpush.bf16.msra.mxu2 %v3131_v39  ;;  %2129 = vmatpush.bf16.msra.mxu3 %v3195_v40  ;;  %v3344_v39 = vld [vmem:[%s5232_s3 + $0x104] sm:$0xf]  ;;  %v3124_v40 = vld [vmem:[%s5232_s3 + $0x108] sm:$0xf0] }
 0x164   :  { %2142 = vmatpush.bf16.msrb.mxu0 %v3007_v6  ;;  %2155 = vmatpush.bf16.msrb.mxu1 %v3071_v48  ;;  %v3127_v47 = vor.u32 %v3344_v39, %v3124_v40 }
 0x167   :  { %2117 = vmatpush.bf16.msra.mxu2 %v3123_v60  ;;  %2130 = vmatpush.bf16.msra.mxu3 %v3187_v13 }
 0x168   :  { %2143 = vmatpush.bf16.msrb.mxu0 %v2999_v62  ;;  %2156 = vmatpush.bf16.msrb.mxu1 %v3063_v63 }
 0x16a   :  { %2118 = vmatmul.bf16.vlgmr.msra.gmra.mxu2 %v618_v29  ;;  %2131 = vmatmul.bf16.vlgmr.msra.gmra.mxu3 %v619_v8 }
 0x16b   :  { %2162 = vmatpush.bf16.msrb.mxu2 %v3183_v1  ;;  %2175 = vmatpush.bf16.msrb.mxu3 %v3247_v2 }
 0x16c   :  { %2144 = vmatmul.bf16.vlgmr.msrb.gmra.mxu0 %v4965_v27  ;;  %2157 = vmatmul.bf16.vlgmr.msrb.gmra.mxu1 %v4967_v54  ;;  %v3220_v27 = vld [vmem:[%s5232_s3 + $0x1c8] sm:$0xf0]  ;;  %v3159_v54 = vor.u32 %v3352_v18, %v3156_v19 }
 0x16d   :  { %v3223_v21 = vor.u32 %v3368_v20, %v3220_v27 }
 0x16f   :  { %2163 = vmatpush.bf16.msrb.mxu2 %v3175_v9  ;;  %2176 = vmatpush.bf16.msrb.mxu3 %v3239_v10  ;;  %v2188_v10 = vld [vmem:[%s5233_s4] sm:$0x3] }
 0x170   :  { %v2191_v39 = vperm.slane %v2188_v10, 1 }
 0x173   :  { %2164 = vmatpush.bf16.msrb.mxu2 %v3167_v16  ;;  %2177 = vmatpush.bf16.msrb.mxu3 %v3231_v17  ;;  %v2190_v16 = vperm.slane %v2188_v10, 0 }
 0x177   :  { %2165 = vmatpush.bf16.msrb.mxu2 %v3159_v54  ;;  %2178 = vmatpush.bf16.msrb.mxu3 %v3223_v21 }
 0x17b   :  { %2166 = vmatpush.bf16.msrb.mxu2 %v3151_v24  ;;  %2179 = vmatpush.bf16.msrb.mxu3 %v3215_v25 }
 0x17f   :  { %2167 = vmatpush.bf16.msrb.mxu2 %v3143_v32  ;;  %2180 = vmatpush.bf16.msrb.mxu3 %v3207_v33  ;;  %v3524_v32 = vld [vmem:[%s5230_s0] sm:$0xff] }
 0x180   :  { %v2214_v33 = vunpack.c.l.bf16 %v3524_v32 }
 0x183   :  { %2168 = vmatpush.bf16.msrb.mxu2 %v3135_v41  ;;  %2181 = vmatpush.bf16.msrb.mxu3 %v3199_v38 }
 0x187   :  { %2169 = vmatpush.bf16.msrb.mxu2 %v3127_v47  ;;  %2182 = vmatpush.bf16.msrb.mxu3 %v3191_v5 }
 0x18a   :  { %2170 = vmatmul.bf16.vlgmr.msrb.gmra.mxu2 %v618_v29  ;;  %2183 = vmatmul.bf16.vlgmr.msrb.gmra.mxu3 %v619_v8 }
 0x1a7   :  { %v1669_v6 = vpop.f32.mrf.mxu0  ;;  %v1682_v48 = vpop.f32.mrf.mxu1 }
 0x1a8   :  { %v1683_v2 = vadd.f32 %v1682_v48, %v1669_v6 }
 0x1af   :  { %v1671_v49 = vpop.f32.mrf.mxu0  ;;  %v1684_v51 = vpop.f32.mrf.mxu1 }
 0x1b7   :  { %v1721_v52 = vpop.f32.mrf.mxu0  ;;  %v1734_v53 = vpop.f32.mrf.mxu1 }
 0x1b8   :  { %v1735_v55 = vadd.f32 %v1734_v53, %v1721_v52 }
 0x1bf   :  { %v1723_v56 = vpop.f32.mrf.mxu0  ;;  %v1736_v57 = vpop.f32.mrf.mxu1 }
 0x1c0   :  { %v2215_v56 = vunpack.c.h.bf16 %v3524_v32 }
 0x1ca   :  { %v2093_v43 = vpop.f32.mrf.mxu0  ;;  %v2106_v58 = vpop.f32.mrf.mxu1 }
 0x1cd   :  { %v1695_v59 = vpop.f32.mrf.mxu2  ;;  %v1708_v60 = vpop.f32.mrf.mxu3 }
 0x1ce   :  { %v1696_v3 = vadd.f32 %v1695_v59, %v1683_v2 }
 0x1d0   :  { %v1709_v4 = vadd.f32 %v1708_v60, %v1696_v3 }
 0x1d2   :  { %v2095_v13 = vpop.f32.mrf.mxu0  ;;  %v2108_v61 = vpop.f32.mrf.mxu1  ;;  %v2094_v29 = vadd.f32 %v2093_v43, %v1709_v4 }
 0x1d4   :  { %v2107_v11 = vadd.f32 %v2106_v58, %v2094_v29 }
 0x1d5   :  { %v1697_v62 = vpop.f32.mrf.mxu2  ;;  %v1710_v63 = vpop.f32.mrf.mxu3 }
 0x1dd   :  { %v1747_v0 = vpop.f32.mrf.mxu2  ;;  %v1760_v1 = vpop.f32.mrf.mxu3 }
 0x1de   :  { %v1748_v24 = vadd.f32 %v1747_v0, %v1735_v55 }
 0x1e0   :  { %v1761_v26 = vadd.f32 %v1760_v1, %v1748_v24 }
 0x1e5   :  { %v1749_v28 = vpop.f32.mrf.mxu2  ;;  %v1762_v7 = vpop.f32.mrf.mxu3 }
 0x1e9   :  { %v2145_v8 = vpop.f32.mrf.mxu0  ;;  %v2158_v9 = vpop.f32.mrf.mxu1 }
 0x1ea   :  { %v2146_v30 = vadd.f32 %v2145_v8, %v1761_v26 }
 0x1ec   :  { %v2159_v45 = vadd.f32 %v2158_v9, %v2146_v30 }
 0x1ed   :  { %v2119_v12 = vpop.f32.mrf.mxu2  ;;  %v2132_v14 = vpop.f32.mrf.mxu3 }
 0x1ee   :  { %v2120_v15 = vadd.f32 %v2119_v12, %v2107_v11 }
 0x1f0   :  { %v2133_v17 = vadd.f32 %v2132_v14, %v2120_v15 }
 0x1f1   :  { %v2147_v18 = vpop.f32.mrf.mxu0  ;;  %v2160_v19 = vpop.f32.mrf.mxu1 }
 0x1f2   :  { %v2194_v20 = vadd.f32 %v2190_v16, %v2133_v17 }
 0x1f4   :  { %v2196_v27 = vmul.f32 %v2194_v20, %v2194_v20 }
 0x1f5   :  { %v2121_v54 = vpop.f32.mrf.mxu2  ;;  %v2134_v21 = vpop.f32.mrf.mxu3 }
 0x1f6   :  { %v2198_v46 = vmul.f32 %v2196_v27, %v2194_v20 }
 0x1f8   :  { %v2200_v36 = vmul.f32 0.044715, %v2198_v46 }
 0x1fa   :  { %v2202_v37 = vadd.f32 %v2200_v36, %v2194_v20 }
 0x1fc   :  { %v2204_v23 = vmul.f32 0.7978846, %v2202_v37 }
 0x1fe   :  { %3520 = vtanh.f32 %v2204_v23 }
 0x204   :  { %v3521_v25 = vpop.eup %3520 }
 0x205   :  { %v2208_v50 = vadd.f32 1.0, %v3521_v25 }
 0x207   :  { %v2210_v31 = vmul.f32 0.5, %v2208_v50 }
 0x209   :  { %v2212_v22 = vmul.f32 %v2210_v31, %v2194_v20 }
 0x20b   :  { %v2216_v34 = vadd.f32 %v2214_v33, %v2212_v22 }
 0x20d   :  { %v2171_v35 = vpop.f32.mrf.mxu2  ;;  %v2184_v41 = vpop.f32.mrf.mxu3  ;;  %2218 = vst [vmem:[%s5234_s5] sm:$0xff] %v2216_v34 }
 0x20e   :  { %v2172_v38 = vadd.f32 %v2171_v35, %v2159_v45 }
 0x210   :  { %v2185_v40 = vadd.f32 %v2184_v41, %v2172_v38 }
 0x212   :  { %v2195_v42 = vadd.f32 %v2191_v39, %v2185_v40 }
 0x214   :  { %v2197_v44 = vmul.f32 %v2195_v42, %v2195_v42 }
 0x215   :  { %v2173_v47 = vpop.f32.mrf.mxu2  ;;  %v2186_v5 = vpop.f32.mrf.mxu3 }
 0x216   :  { %v2199_v6 = vmul.f32 %v2197_v44, %v2195_v42 }
 0x218   :  { %v2201_v48 = vmul.f32 0.044715, %v2199_v6 }
 0x21a   :  { %v2203_v49 = vadd.f32 %v2201_v48, %v2195_v42 }
 0x21c   :  { %v2205_v51 = vmul.f32 0.7978846, %v2203_v49 }
 0x21e   :  { %3522 = vtanh.f32 %v2205_v51 }
 0x224   :  { %v3523_v52 = vpop.eup %3522 }
 0x225   :  { %v2209_v53 = vadd.f32 1.0, %v3523_v52 }
 0x227   :  { %v2211_v55 = vmul.f32 0.5, %v2209_v53 }
 0x229   :  { %v2213_v57 = vmul.f32 %v2211_v55, %v2195_v42 }
 0x22b   :  { %v2217_v43 = vadd.f32 %v2215_v56, %v2213_v57 }
 0x22d   :  { %2219 = vst [vmem:[%s5234_s5 + $0x8] sm:$0xff] %v2217_v43 }

</bundles_post_ra>
